<compile_context>
chip_gen: v7x
topology: tpu7x:2x2x1
jax: 0.10.0
libtpu: 0.0.40
codegen_flags: <defaults>
</compile_context>

<pallas_src>
import jax
import jax.numpy as jnp
from jax.experimental import pallas as pl
from jax.experimental.pallas import tpu as pltpu

EPS = float(jnp.finfo(jnp.float32).eps)   # torch rms_norm default eps for f32


def _rms(t):
    """RMSNorm, no affine; eps matches torch.nn.functional.rms_norm default."""
    return t * jax.lax.rsqrt(jnp.mean(t * t, axis=-1, keepdims=True) + EPS)


# ----------------------------------------------------------------------------
# Fused forward kernel (one batch element per grid step)
# ----------------------------------------------------------------------------
def make_fused_forward_kernel(S, D, heads, dim_head, inner, num_layers):
    H = heads
    dh = dim_head

    def kernel(x_ref, cosq_ref, sinq_ref, cosk_ref, sink_ref,
               wqkv_ref, wo_ref, bo_ref, w1_ref, b1_ref, w2_ref, b2_ref,
               head_ref, lam_ref, o_ref):
        h_state = _rms(x_ref[0])                    # initial rms_norm, (S, D) f32

        cos_q = cosq_ref[...]                       # (S, dh) - attn scale folded in
        sin_q = sinq_ref[...]                       # signed: [+sin | -sin], scaled
        cos_k = cosk_ref[...]
        sin_k = sink_ref[...]

        rows = jax.lax.broadcasted_iota(jnp.int32, (S, S), 0)
        cols = jax.lax.broadcasted_iota(jnp.int32, (S, S), 1)
        causal = (cols <= rows)[None]               # (1, S, S), shared by all heads

        def inv_rms_full(t):
            # projnorm: RMS over (heads, dim_head) == all D elems per token -> (S,1)
            ss = jnp.sum(t * t, axis=-1, keepdims=True)      # (H, S, 1)
            tot = ss[0]
            for hh in range(1, H):                            # static unroll, tiny
                tot = tot + ss[hh]                            # (S, 1)
            return jax.lax.rsqrt(tot * (1.0 / D) + EPS)

        for l in range(num_layers):                 # unrolled: static weight views
            xn = _rms(h_state)                      # layerwise rmsnorm, (S, D) f32
            xnH = jnp.broadcast_to(xn, (H, S, D)).astype(jnp.bfloat16)

            # fused head-batched projection: columns = [q | qP | k | kP | v]
            # (qP/kP are the RoPE "partner" columns: within-head half-rotation
            #  folded into the weights at prep time -> no rolls, no lane shuffles)
            proj = jnp.einsum('hsd,hde->hse', xnH, wqkv_ref[l],
                              preferred_element_type=jnp.float32)   # (H,S,5dh) f32
            q = proj[:, :, 0 * dh:1 * dh]
            qP = proj[:, :, 1 * dh:2 * dh]
            k = proj[:, :, 2 * dh:3 * dh]
            kP = proj[:, :, 3 * dh:4 * dh]
            v = proj[:, :, 4 * dh:5 * dh]

            rq = inv_rms_full(q)                    # (S, 1)
            rk = inv_rms_full(k)
            q_rt = (q * cos_q + qP * sin_q) * rq    # RoPE + projnorm + attn scale
            k_rt = (k * cos_k + kP * sin_k) * rk    # RoPE + projnorm

            # causal attention, batched over heads, bf16 MXU / f32 accumulation
            s = jnp.einsum('hqe,hke->hqk',
                           q_rt.astype(jnp.bfloat16), k_rt.astype(jnp.bfloat16),
                           preferred_element_type=jnp.float32)      # (H, S, S)
            s = jnp.where(causal, s, -1e30)         # mask + exp stay in f32
            p = jnp.exp(s - jnp.max(s, axis=-1, keepdims=True))
            l_sum = jnp.sum(p, axis=-1, keepdims=True)
            y = jnp.einsum('hqk,hke->hqe',
                           p.astype(jnp.bfloat16), v.astype(jnp.bfloat16),
                           preferred_element_type=jnp.float32)      # (H, S, dh)
            y = y * pl.reciprocal(l_sum, approx=True)   # deferred softmax norm

            # per-head output projection, summed over heads (no concat/transpose)
            att = jnp.einsum('hse,hed->hsd', y.astype(jnp.bfloat16), wo_ref[l],
                             preferred_element_type=jnp.float32)    # (H, S, D)
            attn_out = att[0]
            for hh in range(1, H):
                attn_out = attn_out + att[hh]
            attn_out = attn_out + bo_ref[l]

            # SwiGLU MLP (x-half first, gate-half second: matches torch chunk order)
            h1 = jnp.dot(xn.astype(jnp.bfloat16), w1_ref[l],
                         preferred_element_type=jnp.float32) + b1_ref[l]
            x_part = h1[:, :inner]
            gate = h1[:, inner:]
            swig = x_part * gate * pl.reciprocal(1.0 + jnp.exp(-gate), approx=True)
            dense_out = jnp.dot(swig.astype(jnp.bfloat16), w2_ref[l],
                                preferred_element_type=jnp.float32) + b2_ref[l]

            # weighted skip (learnedlambda scalar from SMEM) + dense + attn
            h_state = lam_ref[l] * h_state + dense_out + attn_out

        # final rms_norm + tanh-capped head -- LAST TOKEN ONLY (inference path)
        h_last = _rms(h_state[S - 1:S, :])          # (1, D)
        logits = jnp.dot(h_last.astype(jnp.bfloat16), head_ref[...],
                         preferred_element_type=jnp.float32)        # (1, Vpad)
        o_ref[0] = 30.0 * jnp.tanh(logits * (1.0 / 30.0))

    return kernel


# ----------------------------------------------------------------------------
# RoPE tables: (S, dim_head), bf16-rounded like the torch rotarizer cache.
# The rotation sign lives in the sin table ([+sin | -sin]); the attention scale
# is folded into the q tables so no per-layer multiply is needed.
# ----------------------------------------------------------------------------
def rope_tables(S, dim_head, base, q_scale):
    inv_freq = base ** (-(jnp.arange(0, dim_head, 2, dtype=jnp.float32) / dim_head))
    freqs = jnp.outer(jnp.arange(S, dtype=jnp.float32), inv_freq)   # (S, half)
    cos = jnp.cos(freqs).astype(jnp.bfloat16).astype(jnp.float32)
    sin = jnp.sin(freqs).astype(jnp.bfloat16).astype(jnp.float32)
    cos_t = jnp.concatenate([cos, cos], axis=-1)                    # (S, dim_head)
    sin_t = jnp.concatenate([sin, -sin], axis=-1)                   # signed
    return q_scale * cos_t, q_scale * sin_t, cos_t, sin_t


# ----------------------------------------------------------------------------
# Wrapper
# ----------------------------------------------------------------------------
def pgpt_lformer_forward(index, kparams, cfg, targets=None,
                         return_logits=True, return_zloss=False):
    # TODO(synk): targets/cross-entropy (+z_loss) training path not implemented.
    B, S = index.shape
    D = cfg["dim"]
    H = cfg["headcount"]
    dh = cfg["dim_head"]
    V = cfg["vocab_size"]
    inner = D * cfg["ff_mult"]
    L = cfg["num_layers"]
    Vp = kparams["head"].shape[-1]                  # vocab padded to mult of 128
    base = float(cfg.get("rotary_embedding_base", 1000))
    scale = dh ** (-0.5)

    # embedding gather stays in XLA (tiny); everything else is one fused kernel.
    x = jnp.take(kparams["embed"], index, axis=0)   # (B, S, D) f32
    cos_q, sin_q, cos_k, sin_k = rope_tables(S, dh, base, scale)

    out = pl.pallas_call(
        make_fused_forward_kernel(S, D, H, dh, inner, L),
        grid=(B,),
        in_specs=[
            pl.BlockSpec((1, S, D), lambda b: (b, 0, 0)),             # x (per batch)
            pl.BlockSpec((S, dh), lambda b: (0, 0)),                  # cos_q
            pl.BlockSpec((S, dh), lambda b: (0, 0)),                  # sin_q
            pl.BlockSpec((S, dh), lambda b: (0, 0)),                  # cos_k
            pl.BlockSpec((S, dh), lambda b: (0, 0)),                  # sin_k
            pl.BlockSpec((L, H, D, 5 * dh), lambda b: (0, 0, 0, 0)),  # wqkv  (bf16)
            pl.BlockSpec((L, H, dh, D), lambda b: (0, 0, 0, 0)),      # wo    (bf16)
            pl.BlockSpec((L, 1, D), lambda b: (0, 0, 0)),             # bo    (f32)
            pl.BlockSpec((L, D, 2 * inner), lambda b: (0, 0, 0)),     # w1    (bf16)
            pl.BlockSpec((L, 1, 2 * inner), lambda b: (0, 0, 0)),     # b1    (f32)
            pl.BlockSpec((L, inner, D), lambda b: (0, 0, 0)),         # w2    (bf16)
            pl.BlockSpec((L, 1, D), lambda b: (0, 0, 0)),             # b2    (f32)
            pl.BlockSpec((D, Vp), lambda b: (0, 0)),                  # head  (bf16)
            pl.BlockSpec(memory_space=pltpu.MemorySpace.SMEM),        # lam scalars
        ],
        out_specs=pl.BlockSpec((1, 1, Vp), lambda b: (b, 0, 0)),
        out_shape=jax.ShapeDtypeStruct((B, 1, Vp), jnp.float32),
        compiler_params=pltpu.CompilerParams(
            dimension_semantics=("parallel",),      # megacore sharding on v7x
            vmem_limit_bytes=32 * 1024 * 1024),
    )(x, cos_q, sin_q, cos_k, sin_k,
      kparams["wqkv"], kparams["wo"], kparams["bo"],
      kparams["w1"], kparams["b1"], kparams["w2"], kparams["b2"],
      kparams["head"], kparams["lam"])

    logits = out[:, :, :V]                          # strip vocab padding -> (B,1,V)
    loss = None
    z_loss = None
    if not return_logits:
        logits = None
    return logits, loss, z_loss


# ----------------------------------------------------------------------------
# Deterministic parameter init + wrapper-side layout prep
# ----------------------------------------------------------------------------
def init_raw_params(key, cfg):
    D = cfg["dim"]
    inner = D * cfg["ff_mult"]
    V = cfg["vocab_size"]
    L = cfg["num_layers"]
    keys = jax.random.split(key, 2 + L)

    def w(k, shp):
        return 0.02 * jax.random.normal(k, shp, jnp.float32)

    layers = []
    for l in range(L):
        ks = jax.random.split(keys[2 + l], 6)
        layers.append(dict(
            wq=w(ks[0], (D, D)), wk=w(ks[1], (D, D)), wv=w(ks[2], (D, D)),
            wo=w(ks[3], (D, D)),
            w1=w(ks[4], (D, 2 * inner)), w2=w(ks[5], (inner, D)),
            bo=jnp.zeros((D,), jnp.float32),
            b1=jnp.zeros((2 * inner,), jnp.float32),
            b2=jnp.zeros((D,), jnp.float32),
            lam=1.0,                                # learnedlambda init = 1.0
        ))
    return dict(
        embed=w(keys[0], (V, D)),
        # NOTE: the PyTorch module zero-inits the head; random here so the head
        # matmul is non-trivial (deterministic via PRNGKey(0)).
        head=w(keys[1], (D, V)),
        layers=layers,
    )


def prepare_kernel_params(raw, cfg):
    """Layout prep: head-major weight grouping, RoPE partner permutation folded
    into extra q/k columns, bf16 casts for MXU operands, vocab padding to 128."""
    D = cfg["dim"]
    H = cfg["headcount"]
    dh = cfg["dim_head"]
    half = dh // 2
    inner = D * cfg["ff_mult"]
    V = cfg["vocab_size"]
    Vp = ((V + 127) // 128) * 128

    def hm(t3):                                     # (D, H, dh) -> (H, D, dh)
        return jnp.transpose(t3, (1, 0, 2))

    wqkv, wo, bo, w1, b1, w2, b2, lam = [], [], [], [], [], [], [], []
    for lp in raw["layers"]:
        wq3 = lp["wq"].reshape(D, H, dh)
        wk3 = lp["wk"].reshape(D, H, dh)
        wv3 = lp["wv"].reshape(D, H, dh)
        # partner columns: column u of head h picks original column (u+half)%dh,
        # i.e. q_partner[s,h,u] = q[s,h,partner(u)] -> RoPE without any roll.
        wq3p = jnp.roll(wq3, -half, axis=-1)
        wk3p = jnp.roll(wk3, -half, axis=-1)
        wqkv.append(jnp.concatenate(
            [hm(wq3), hm(wq3p), hm(wk3), hm(wk3p), hm(wv3)], axis=-1))  # (H,D,5dh)
        wo.append(lp["wo"].reshape(H, dh, D))
        bo.append(lp["bo"].reshape(1, D))
        w1.append(lp["w1"])
        b1.append(lp["b1"].reshape(1, 2 * inner))
        w2.append(lp["w2"])
        b2.append(lp["b2"].reshape(1, D))
        lam.append(lp["lam"])

    head = jnp.pad(raw["head"], ((0, 0), (0, Vp - V)))      # lane-dense vocab pad

    bf = jnp.bfloat16
    return dict(
        embed=raw["embed"],                          # (V, D) f32
        wqkv=jnp.stack(wqkv).astype(bf),             # (L, H, D, 5*dh)
        wo=jnp.stack(wo).astype(bf),                 # (L, H, dh, D)
        bo=jnp.stack(bo),                            # (L, 1, D) f32
        w1=jnp.stack(w1).astype(bf),                 # (L, D, 2*inner)
        b1=jnp.stack(b1),                            # (L, 1, 2*inner) f32
        w2=jnp.stack(w2).astype(bf),                 # (L, inner, D)
        b2=jnp.stack(b2),                            # (L, 1, D) f32
        head=head.astype(bf),                        # (D, Vp)
        lam=jnp.array(lam, jnp.float32),             # (L,)  -> SMEM scalars
    )


if __name__ == "__main__":
    cfg = {
        "vocab_size": 64,
        "dim": 32,
        "dim_head": 8,
        "headcount": 4,
        "ff_mult": 2,
        "num_layers": 2,
        "lambda": True,
        "layerwisenorm": "rmsnorm",
        "qknorm": "rmsnorm",
        "training_seqlen": 8,
    }
    key = jax.random.PRNGKey(0)
    pkey, ikey = jax.random.split(key)
    raw = init_raw_params(pkey, cfg)
    kparams = prepare_kernel_params(raw, cfg)

    B, S = 2, 8
    index = jax.random.randint(ikey, (B, S), 0, cfg["vocab_size"], dtype=jnp.int32)

    logits, loss, z_loss = pgpt_lformer_forward(index, kparams, cfg)
    logits = jax.block_until_ready(logits)
    assert logits.shape == (B, 1, cfg["vocab_size"])
    assert logits.dtype == jnp.float32
    assert bool(jnp.all(jnp.isfinite(logits)))
    print("KERNEL_OK")
</pallas_src>

<mosaic_0001>
module attributes {stable_mosaic.version = 11 : i64} {
  func.func @kernel(%arg0: i32, %arg1: memref<1x8x32xf32, #tpu.memory_space<vmem>>, %arg2: memref<8x8xf32, #tpu.memory_space<vmem>>, %arg3: memref<8x8xf32, #tpu.memory_space<vmem>>, %arg4: memref<8x8xf32, #tpu.memory_space<vmem>>, %arg5: memref<8x8xf32, #tpu.memory_space<vmem>>, %arg6: memref<2x4x32x40xbf16, #tpu.memory_space<vmem>>, %arg7: memref<2x4x8x32xbf16, #tpu.memory_space<vmem>>, %arg8: memref<2x1x32xf32, #tpu.memory_space<vmem>>, %arg9: memref<2x32x128xbf16, #tpu.memory_space<vmem>>, %arg10: memref<2x1x128xf32, #tpu.memory_space<vmem>>, %arg11: memref<2x64x32xbf16, #tpu.memory_space<vmem>>, %arg12: memref<2x1x32xf32, #tpu.memory_space<vmem>>, %arg13: memref<32x128xbf16, #tpu.memory_space<vmem>>, %arg14: memref<2xf32, #tpu.memory_space<smem>>, %arg15: memref<1x1x128xf32, #tpu.memory_space<vmem>>) attributes {dimension_semantics = [#tpu.dimension_semantics<parallel>], iteration_bounds = array<i64: 2>, scalar_prefetch = 0 : i64, scratch_operands = 0 : i64, tpu.core_type = #tpu.core_type<tc>, window_params = [{transform_indices = @transform_0, window_bounds = array<i64: 1, 8, 32>}, {pipeline_mode = #tpu.pipeline_mode<synchronous>, transform_indices = @transform_1, window_bounds = array<i64: 8, 8>}, {pipeline_mode = #tpu.pipeline_mode<synchronous>, transform_indices = @transform_2, window_bounds = array<i64: 8, 8>}, {pipeline_mode = #tpu.pipeline_mode<synchronous>, transform_indices = @transform_3, window_bounds = array<i64: 8, 8>}, {pipeline_mode = #tpu.pipeline_mode<synchronous>, transform_indices = @transform_4, window_bounds = array<i64: 8, 8>}, {pipeline_mode = #tpu.pipeline_mode<synchronous>, transform_indices = @transform_5, window_bounds = array<i64: 2, 4, 32, 40>}, {pipeline_mode = #tpu.pipeline_mode<synchronous>, transform_indices = @transform_6, window_bounds = array<i64: 2, 4, 8, 32>}, {pipeline_mode = #tpu.pipeline_mode<synchronous>, transform_indices = @transform_7, window_bounds = array<i64: 2, 1, 32>}, {pipeline_mode = #tpu.pipeline_mode<synchronous>, transform_indices = @transform_8, window_bounds = array<i64: 2, 32, 128>}, {pipeline_mode = #tpu.pipeline_mode<synchronous>, transform_indices = @transform_9, window_bounds = array<i64: 2, 1, 128>}, {pipeline_mode = #tpu.pipeline_mode<synchronous>, transform_indices = @transform_10, window_bounds = array<i64: 2, 64, 32>}, {pipeline_mode = #tpu.pipeline_mode<synchronous>, transform_indices = @transform_11, window_bounds = array<i64: 2, 1, 32>}, {pipeline_mode = #tpu.pipeline_mode<synchronous>, transform_indices = @transform_12, window_bounds = array<i64: 32, 128>}, {transform_indices = @transform_13, window_bounds = array<i64: 2>}, {transform_indices = @transform_14, window_bounds = array<i64: 1, 1, 128>}]} {
    %c0 = arith.constant 0 : index
    %c0_0 = arith.constant 0 : index
    %c0_1 = arith.constant 0 : index
    %0 = vector.load %arg1[%c0, %c0_0, %c0_1] : memref<1x8x32xf32, #tpu.memory_space<vmem>>, vector<1x8x32xf32>
    %1 = vector.shape_cast %0 : vector<1x8x32xf32> to vector<8x32xf32>
    %2 = arith.mulf %1, %1 : vector<8x32xf32>
    %cst = arith.constant dense<0.000000e+00> : vector<8xf32>
    %3 = vector.multi_reduction <add>, %2, %cst [1] : vector<8x32xf32> to vector<8xf32>
    %4 = vector.shape_cast %3 : vector<8xf32> to vector<8x1xf32>
    %cst_2 = arith.constant 3.200000e+01 : f32
    %5 = vector.broadcast %cst_2 : f32 to vector<8x1xf32>
    %6 = arith.divf %4, %5 : vector<8x1xf32>
    %cst_3 = arith.constant 1.1920929E-7 : f32
    %7 = vector.broadcast %cst_3 : f32 to vector<8x1xf32>
    %8 = arith.addf %6, %7 : vector<8x1xf32>
    %9 = math.rsqrt %8 : vector<8x1xf32>
    %10 = vector.broadcast %9 : vector<8x1xf32> to vector<8x32xf32>
    %11 = arith.mulf %1, %10 : vector<8x32xf32>
    %c0_4 = arith.constant 0 : index
    %c0_5 = arith.constant 0 : index
    %12 = vector.load %arg2[%c0_4, %c0_5] : memref<8x8xf32, #tpu.memory_space<vmem>>, vector<8x8xf32>
    %c0_6 = arith.constant 0 : index
    %c0_7 = arith.constant 0 : index
    %13 = vector.load %arg3[%c0_6, %c0_7] : memref<8x8xf32, #tpu.memory_space<vmem>>, vector<8x8xf32>
    %c0_8 = arith.constant 0 : index
    %c0_9 = arith.constant 0 : index
    %14 = vector.load %arg4[%c0_8, %c0_9] : memref<8x8xf32, #tpu.memory_space<vmem>>, vector<8x8xf32>
    %c0_10 = arith.constant 0 : index
    %c0_11 = arith.constant 0 : index
    %15 = vector.load %arg5[%c0_10, %c0_11] : memref<8x8xf32, #tpu.memory_space<vmem>>, vector<8x8xf32>
    %16 = tpu.iota {dimensions = array<i32: 0>} : vector<8x8xi32>
    %17 = tpu.iota {dimensions = array<i32: 1>} : vector<8x8xi32>
    %18 = arith.cmpi sle, %17, %16 : vector<8x8xi32>
    %19 = vector.shape_cast %18 : vector<8x8xi1> to vector<1x8x8xi1>
    %20 = arith.mulf %11, %11 : vector<8x32xf32>
    %cst_12 = arith.constant dense<0.000000e+00> : vector<8xf32>
    %21 = vector.multi_reduction <add>, %20, %cst_12 [1] : vector<8x32xf32> to vector<8xf32>
    %22 = vector.shape_cast %21 : vector<8xf32> to vector<8x1xf32>
    %cst_13 = arith.constant 3.200000e+01 : f32
    %23 = vector.broadcast %cst_13 : f32 to vector<8x1xf32>
    %24 = arith.divf %22, %23 : vector<8x1xf32>
    %cst_14 = arith.constant 1.1920929E-7 : f32
    %25 = vector.broadcast %cst_14 : f32 to vector<8x1xf32>
    %26 = arith.addf %24, %25 : vector<8x1xf32>
    %27 = math.rsqrt %26 : vector<8x1xf32>
    %28 = vector.broadcast %27 : vector<8x1xf32> to vector<8x32xf32>
    %29 = arith.mulf %11, %28 : vector<8x32xf32>
    %30 = vector.shape_cast %29 : vector<8x32xf32> to vector<1x8x32xf32>
    %31 = vector.broadcast %30 : vector<1x8x32xf32> to vector<4x8x32xf32>
    %32 = arith.truncf %31 : vector<4x8x32xf32> to vector<4x8x32xbf16>
    %c0_15 = arith.constant 0 : index
    %c0_16 = arith.constant 0 : index
    %c0_17 = arith.constant 0 : index
    %c0_18 = arith.constant 0 : index
    %33 = vector.load %arg6[%c0_15, %c0_16, %c0_17, %c0_18] : memref<2x4x32x40xbf16, #tpu.memory_space<vmem>>, vector<1x4x32x40xbf16>
    %34 = vector.shape_cast %33 : vector<1x4x32x40xbf16> to vector<4x32x40xbf16>
    "tpu.trace_start"() <{level = 10 : i32, message = "hsd,hde->hse"}> : () -> ()
    %cst_19 = arith.constant dense<0.000000e+00> : vector<4x8x40xf32>
    %35 = tpu.matmul %32, %34, %cst_19 {dimension_numbers = #tpu.dot_dimension_numbers<[2], [1], [1], [2], [0, 0, 0, 1, 1, 2], [0], [0]>} : vector<4x8x32xbf16>, vector<4x32x40xbf16>, vector<4x8x40xf32> -> vector<4x8x40xf32>
    "tpu.trace_stop"() : () -> ()
    %36 = vector.extract_strided_slice %35 {offsets = [0, 0, 0], sizes = [4, 8, 8], strides = [1, 1, 1]} : vector<4x8x40xf32> to vector<4x8x8xf32>
    %37 = vector.extract_strided_slice %35 {offsets = [0, 0, 8], sizes = [4, 8, 8], strides = [1, 1, 1]} : vector<4x8x40xf32> to vector<4x8x8xf32>
    %38 = vector.extract_strided_slice %35 {offsets = [0, 0, 16], sizes = [4, 8, 8], strides = [1, 1, 1]} : vector<4x8x40xf32> to vector<4x8x8xf32>
    %39 = vector.extract_strided_slice %35 {offsets = [0, 0, 24], sizes = [4, 8, 8], strides = [1, 1, 1]} : vector<4x8x40xf32> to vector<4x8x8xf32>
    %40 = vector.extract_strided_slice %35 {offsets = [0, 0, 32], sizes = [4, 8, 8], strides = [1, 1, 1]} : vector<4x8x40xf32> to vector<4x8x8xf32>
    %41 = arith.mulf %36, %36 : vector<4x8x8xf32>
    %cst_20 = arith.constant dense<0.000000e+00> : vector<4x8xf32>
    %42 = vector.multi_reduction <add>, %41, %cst_20 [2] : vector<4x8x8xf32> to vector<4x8xf32>
    %43 = vector.shape_cast %42 : vector<4x8xf32> to vector<4x8x1xf32>
    %44 = vector.extract_strided_slice %43 {offsets = [0, 0, 0], sizes = [1, 8, 1], strides = [1, 1, 1]} : vector<4x8x1xf32> to vector<1x8x1xf32>
    %45 = vector.shape_cast %44 : vector<1x8x1xf32> to vector<8x1xf32>
    %46 = vector.extract_strided_slice %43 {offsets = [1, 0, 0], sizes = [1, 8, 1], strides = [1, 1, 1]} : vector<4x8x1xf32> to vector<1x8x1xf32>
    %47 = vector.shape_cast %46 : vector<1x8x1xf32> to vector<8x1xf32>
    %48 = arith.addf %45, %47 : vector<8x1xf32>
    %49 = vector.extract_strided_slice %43 {offsets = [2, 0, 0], sizes = [1, 8, 1], strides = [1, 1, 1]} : vector<4x8x1xf32> to vector<1x8x1xf32>
    %50 = vector.shape_cast %49 : vector<1x8x1xf32> to vector<8x1xf32>
    %51 = arith.addf %48, %50 : vector<8x1xf32>
    %52 = vector.extract_strided_slice %43 {offsets = [3, 0, 0], sizes = [1, 8, 1], strides = [1, 1, 1]} : vector<4x8x1xf32> to vector<1x8x1xf32>
    %53 = vector.shape_cast %52 : vector<1x8x1xf32> to vector<8x1xf32>
    %54 = arith.addf %51, %53 : vector<8x1xf32>
    %cst_21 = arith.constant 3.125000e-02 : f32
    %55 = vector.broadcast %cst_21 : f32 to vector<8x1xf32>
    %56 = arith.mulf %54, %55 : vector<8x1xf32>
    %cst_22 = arith.constant 1.1920929E-7 : f32
    %57 = vector.broadcast %cst_22 : f32 to vector<8x1xf32>
    %58 = arith.addf %56, %57 : vector<8x1xf32>
    %59 = math.rsqrt %58 : vector<8x1xf32>
    %60 = arith.mulf %38, %38 : vector<4x8x8xf32>
    %cst_23 = arith.constant dense<0.000000e+00> : vector<4x8xf32>
    %61 = vector.multi_reduction <add>, %60, %cst_23 [2] : vector<4x8x8xf32> to vector<4x8xf32>
    %62 = vector.shape_cast %61 : vector<4x8xf32> to vector<4x8x1xf32>
    %63 = vector.extract_strided_slice %62 {offsets = [0, 0, 0], sizes = [1, 8, 1], strides = [1, 1, 1]} : vector<4x8x1xf32> to vector<1x8x1xf32>
    %64 = vector.shape_cast %63 : vector<1x8x1xf32> to vector<8x1xf32>
    %65 = vector.extract_strided_slice %62 {offsets = [1, 0, 0], sizes = [1, 8, 1], strides = [1, 1, 1]} : vector<4x8x1xf32> to vector<1x8x1xf32>
    %66 = vector.shape_cast %65 : vector<1x8x1xf32> to vector<8x1xf32>
    %67 = arith.addf %64, %66 : vector<8x1xf32>
    %68 = vector.extract_strided_slice %62 {offsets = [2, 0, 0], sizes = [1, 8, 1], strides = [1, 1, 1]} : vector<4x8x1xf32> to vector<1x8x1xf32>
    %69 = vector.shape_cast %68 : vector<1x8x1xf32> to vector<8x1xf32>
    %70 = arith.addf %67, %69 : vector<8x1xf32>
    %71 = vector.extract_strided_slice %62 {offsets = [3, 0, 0], sizes = [1, 8, 1], strides = [1, 1, 1]} : vector<4x8x1xf32> to vector<1x8x1xf32>
    %72 = vector.shape_cast %71 : vector<1x8x1xf32> to vector<8x1xf32>
    %73 = arith.addf %70, %72 : vector<8x1xf32>
    %cst_24 = arith.constant 3.125000e-02 : f32
    %74 = vector.broadcast %cst_24 : f32 to vector<8x1xf32>
    %75 = arith.mulf %73, %74 : vector<8x1xf32>
    %cst_25 = arith.constant 1.1920929E-7 : f32
    %76 = vector.broadcast %cst_25 : f32 to vector<8x1xf32>
    %77 = arith.addf %75, %76 : vector<8x1xf32>
    %78 = math.rsqrt %77 : vector<8x1xf32>
    %79 = vector.shape_cast %12 : vector<8x8xf32> to vector<1x8x8xf32>
    %80 = vector.broadcast %79 : vector<1x8x8xf32> to vector<4x8x8xf32>
    %81 = arith.mulf %36, %80 : vector<4x8x8xf32>
    %82 = vector.shape_cast %13 : vector<8x8xf32> to vector<1x8x8xf32>
    %83 = vector.broadcast %82 : vector<1x8x8xf32> to vector<4x8x8xf32>
    %84 = arith.mulf %37, %83 : vector<4x8x8xf32>
    %85 = arith.addf %81, %84 : vector<4x8x8xf32>
    %86 = vector.shape_cast %59 : vector<8x1xf32> to vector<1x8x1xf32>
    %87 = vector.broadcast %86 : vector<1x8x1xf32> to vector<4x8x8xf32>
    %88 = arith.mulf %85, %87 : vector<4x8x8xf32>
    %89 = vector.shape_cast %14 : vector<8x8xf32> to vector<1x8x8xf32>
    %90 = vector.broadcast %89 : vector<1x8x8xf32> to vector<4x8x8xf32>
    %91 = arith.mulf %38, %90 : vector<4x8x8xf32>
    %92 = vector.shape_cast %15 : vector<8x8xf32> to vector<1x8x8xf32>
    %93 = vector.broadcast %92 : vector<1x8x8xf32> to vector<4x8x8xf32>
    %94 = arith.mulf %39, %93 : vector<4x8x8xf32>
    %95 = arith.addf %91, %94 : vector<4x8x8xf32>
    %96 = vector.shape_cast %78 : vector<8x1xf32> to vector<1x8x1xf32>
    %97 = vector.broadcast %96 : vector<1x8x1xf32> to vector<4x8x8xf32>
    %98 = arith.mulf %95, %97 : vector<4x8x8xf32>
    %99 = arith.truncf %88 : vector<4x8x8xf32> to vector<4x8x8xbf16>
    %100 = arith.truncf %98 : vector<4x8x8xf32> to vector<4x8x8xbf16>
    "tpu.trace_start"() <{level = 10 : i32, message = "hqe,hke->hqk"}> : () -> ()
    %cst_26 = arith.constant dense<0.000000e+00> : vector<4x8x8xf32>
    %101 = tpu.matmul %99, %100, %cst_26 {dimension_numbers = #tpu.dot_dimension_numbers<[2], [2], [1], [1], [0, 0, 0, 1, 1, 1], [0], [0]>} : vector<4x8x8xbf16>, vector<4x8x8xbf16>, vector<4x8x8xf32> -> vector<4x8x8xf32>
    %cst_27 = arith.constant -1.000000e+30 : f32
    "tpu.trace_stop"() : () -> ()
    %102 = vector.shape_cast %19 : vector<1x8x8xi1> to vector<1x8x8xi1>
    %103 = vector.broadcast %102 : vector<1x8x8xi1> to vector<4x8x8xi1>
    %104 = vector.broadcast %cst_27 : f32 to vector<4x8x8xf32>
    %105 = arith.select %103, %101, %104 : vector<4x8x8xi1>, vector<4x8x8xf32>
    %cst_28 = arith.constant dense<0xFF800000> : vector<4x8xf32>
    %106 = vector.multi_reduction <maximumf>, %105, %cst_28 [2] : vector<4x8x8xf32> to vector<4x8xf32>
    %107 = vector.shape_cast %106 : vector<4x8xf32> to vector<4x8x1xf32>
    %108 = vector.broadcast %107 : vector<4x8x1xf32> to vector<4x8x8xf32>
    %109 = arith.subf %105, %108 : vector<4x8x8xf32>
    %110 = math.exp %109 : vector<4x8x8xf32>
    %cst_29 = arith.constant dense<0.000000e+00> : vector<4x8xf32>
    %111 = vector.multi_reduction <add>, %110, %cst_29 [2] : vector<4x8x8xf32> to vector<4x8xf32>
    %112 = vector.shape_cast %111 : vector<4x8xf32> to vector<4x8x1xf32>
    %113 = arith.truncf %110 : vector<4x8x8xf32> to vector<4x8x8xbf16>
    %114 = arith.truncf %40 : vector<4x8x8xf32> to vector<4x8x8xbf16>
    "tpu.trace_start"() <{level = 10 : i32, message = "hqk,hke->hqe"}> : () -> ()
    %cst_30 = arith.constant dense<0.000000e+00> : vector<4x8x8xf32>
    %115 = tpu.matmul %113, %114, %cst_30 {dimension_numbers = #tpu.dot_dimension_numbers<[2], [1], [1], [2], [0, 0, 0, 1, 1, 2], [0], [0]>} : vector<4x8x8xbf16>, vector<4x8x8xbf16>, vector<4x8x8xf32> -> vector<4x8x8xf32>
    "tpu.trace_stop"() : () -> ()
    %116 = tpu.reciprocal %112 {approx = true} : vector<4x8x1xf32> -> vector<4x8x1xf32>
    %117 = vector.broadcast %116 : vector<4x8x1xf32> to vector<4x8x8xf32>
    %118 = arith.mulf %115, %117 : vector<4x8x8xf32>
    %119 = arith.truncf %118 : vector<4x8x8xf32> to vector<4x8x8xbf16>
    %c0_31 = arith.constant 0 : index
    %c0_32 = arith.constant 0 : index
    %c0_33 = arith.constant 0 : index
    %c0_34 = arith.constant 0 : index
    %120 = vector.load %arg7[%c0_31, %c0_32, %c0_33, %c0_34] : memref<2x4x8x32xbf16, #tpu.memory_space<vmem>>, vector<1x4x8x32xbf16>
    %121 = vector.shape_cast %120 : vector<1x4x8x32xbf16> to vector<4x8x32xbf16>
    "tpu.trace_start"() <{level = 10 : i32, message = "hse,hed->hsd"}> : () -> ()
    %cst_35 = arith.constant dense<0.000000e+00> : vector<4x8x32xf32>
    %122 = tpu.matmul %119, %121, %cst_35 {dimension_numbers = #tpu.dot_dimension_numbers<[2], [1], [1], [2], [0, 0, 0, 1, 1, 2], [0], [0]>} : vector<4x8x8xbf16>, vector<4x8x32xbf16>, vector<4x8x32xf32> -> vector<4x8x32xf32>
    "tpu.trace_stop"() : () -> ()
    %123 = vector.extract_strided_slice %122 {offsets = [0, 0, 0], sizes = [1, 8, 32], strides = [1, 1, 1]} : vector<4x8x32xf32> to vector<1x8x32xf32>
    %124 = vector.shape_cast %123 : vector<1x8x32xf32> to vector<8x32xf32>
    %125 = vector.extract_strided_slice %122 {offsets = [1, 0, 0], sizes = [1, 8, 32], strides = [1, 1, 1]} : vector<4x8x32xf32> to vector<1x8x32xf32>
    %126 = vector.shape_cast %125 : vector<1x8x32xf32> to vector<8x32xf32>
    %127 = arith.addf %124, %126 : vector<8x32xf32>
    %128 = vector.extract_strided_slice %122 {offsets = [2, 0, 0], sizes = [1, 8, 32], strides = [1, 1, 1]} : vector<4x8x32xf32> to vector<1x8x32xf32>
    %129 = vector.shape_cast %128 : vector<1x8x32xf32> to vector<8x32xf32>
    %130 = arith.addf %127, %129 : vector<8x32xf32>
    %131 = vector.extract_strided_slice %122 {offsets = [3, 0, 0], sizes = [1, 8, 32], strides = [1, 1, 1]} : vector<4x8x32xf32> to vector<1x8x32xf32>
    %132 = vector.shape_cast %131 : vector<1x8x32xf32> to vector<8x32xf32>
    %133 = arith.addf %130, %132 : vector<8x32xf32>
    %c0_36 = arith.constant 0 : index
    %c0_37 = arith.constant 0 : index
    %c0_38 = arith.constant 0 : index
    %134 = vector.load %arg8[%c0_36, %c0_37, %c0_38] : memref<2x1x32xf32, #tpu.memory_space<vmem>>, vector<1x1x32xf32>
    %135 = vector.shape_cast %134 : vector<1x1x32xf32> to vector<1x32xf32>
    %136 = vector.broadcast %135 : vector<1x32xf32> to vector<8x32xf32>
    %137 = arith.addf %133, %136 : vector<8x32xf32>
    %138 = arith.truncf %29 : vector<8x32xf32> to vector<8x32xbf16>
    %c0_39 = arith.constant 0 : index
    %c0_40 = arith.constant 0 : index
    %c0_41 = arith.constant 0 : index
    %139 = vector.load %arg9[%c0_39, %c0_40, %c0_41] : memref<2x32x128xbf16, #tpu.memory_space<vmem>>, vector<1x32x128xbf16>
    %140 = vector.shape_cast %139 : vector<1x32x128xbf16> to vector<32x128xbf16>
    %cst_42 = arith.constant dense<0.000000e+00> : vector<8x128xf32>
    %141 = tpu.matmul %138, %140, %cst_42 {dimension_numbers = #tpu.dot_dimension_numbers<[1], [0], [0], [1], [0, 0, 1, 1], [], []>} : vector<8x32xbf16>, vector<32x128xbf16>, vector<8x128xf32> -> vector<8x128xf32>
    %c0_43 = arith.constant 0 : index
    %c0_44 = arith.constant 0 : index
    %c0_45 = arith.constant 0 : index
    %142 = vector.load %arg10[%c0_43, %c0_44, %c0_45] : memref<2x1x128xf32, #tpu.memory_space<vmem>>, vector<1x1x128xf32>
    %143 = vector.shape_cast %142 : vector<1x1x128xf32> to vector<1x128xf32>
    %144 = vector.broadcast %143 : vector<1x128xf32> to vector<8x128xf32>
    %145 = arith.addf %141, %144 : vector<8x128xf32>
    %146 = vector.extract_strided_slice %145 {offsets = [0, 0], sizes = [8, 64], strides = [1, 1]} : vector<8x128xf32> to vector<8x64xf32>
    %147 = vector.extract_strided_slice %145 {offsets = [0, 64], sizes = [8, 64], strides = [1, 1]} : vector<8x128xf32> to vector<8x64xf32>
    %148 = arith.mulf %146, %147 : vector<8x64xf32>
    %cst_46 = arith.constant 0.000000e+00 : f32
    %149 = vector.broadcast %cst_46 : f32 to vector<8x64xf32>
    %150 = arith.subf %149, %147 : vector<8x64xf32>
    %151 = math.exp %150 : vector<8x64xf32>
    %cst_47 = arith.constant 1.000000e+00 : f32
    %152 = vector.broadcast %cst_47 : f32 to vector<8x64xf32>
    %153 = arith.addf %152, %151 : vector<8x64xf32>
    %154 = tpu.reciprocal %153 {approx = true} : vector<8x64xf32> -> vector<8x64xf32>
    %155 = arith.mulf %148, %154 : vector<8x64xf32>
    %156 = arith.truncf %155 : vector<8x64xf32> to vector<8x64xbf16>
    %c0_48 = arith.constant 0 : index
    %c0_49 = arith.constant 0 : index
    %c0_50 = arith.constant 0 : index
    %157 = vector.load %arg11[%c0_48, %c0_49, %c0_50] : memref<2x64x32xbf16, #tpu.memory_space<vmem>>, vector<1x64x32xbf16>
    %158 = vector.shape_cast %157 : vector<1x64x32xbf16> to vector<64x32xbf16>
    %cst_51 = arith.constant dense<0.000000e+00> : vector<8x32xf32>
    %159 = tpu.matmul %156, %158, %cst_51 {dimension_numbers = #tpu.dot_dimension_numbers<[1], [0], [0], [1], [0, 0, 1, 1], [], []>} : vector<8x64xbf16>, vector<64x32xbf16>, vector<8x32xf32> -> vector<8x32xf32>
    %c0_52 = arith.constant 0 : index
    %c0_53 = arith.constant 0 : index
    %c0_54 = arith.constant 0 : index
    %160 = vector.load %arg12[%c0_52, %c0_53, %c0_54] : memref<2x1x32xf32, #tpu.memory_space<vmem>>, vector<1x1x32xf32>
    %161 = vector.shape_cast %160 : vector<1x1x32xf32> to vector<1x32xf32>
    %162 = vector.broadcast %161 : vector<1x32xf32> to vector<8x32xf32>
    %163 = arith.addf %159, %162 : vector<8x32xf32>
    %c0_55 = arith.constant 0 : index
    %164 = memref.load %arg14[%c0_55] : memref<2xf32, #tpu.memory_space<smem>>
    %165 = vector.broadcast %164 : f32 to vector<8x32xf32>
    %166 = arith.mulf %165, %11 : vector<8x32xf32>
    %167 = arith.addf %166, %163 : vector<8x32xf32>
    %168 = arith.addf %167, %137 : vector<8x32xf32>
    %169 = arith.mulf %168, %168 : vector<8x32xf32>
    %cst_56 = arith.constant dense<0.000000e+00> : vector<8xf32>
    %170 = vector.multi_reduction <add>, %169, %cst_56 [1] : vector<8x32xf32> to vector<8xf32>
    %171 = vector.shape_cast %170 : vector<8xf32> to vector<8x1xf32>
    %cst_57 = arith.constant 3.200000e+01 : f32
    %172 = vector.broadcast %cst_57 : f32 to vector<8x1xf32>
    %173 = arith.divf %171, %172 : vector<8x1xf32>
    %cst_58 = arith.constant 1.1920929E-7 : f32
    %174 = vector.broadcast %cst_58 : f32 to vector<8x1xf32>
    %175 = arith.addf %173, %174 : vector<8x1xf32>
    %176 = math.rsqrt %175 : vector<8x1xf32>
    %177 = vector.broadcast %176 : vector<8x1xf32> to vector<8x32xf32>
    %178 = arith.mulf %168, %177 : vector<8x32xf32>
    %179 = vector.shape_cast %178 : vector<8x32xf32> to vector<1x8x32xf32>
    %180 = vector.broadcast %179 : vector<1x8x32xf32> to vector<4x8x32xf32>
    %181 = arith.truncf %180 : vector<4x8x32xf32> to vector<4x8x32xbf16>
    %c1 = arith.constant 1 : index
    %c0_59 = arith.constant 0 : index
    %c0_60 = arith.constant 0 : index
    %c0_61 = arith.constant 0 : index
    %182 = vector.load %arg6[%c1, %c0_59, %c0_60, %c0_61] : memref<2x4x32x40xbf16, #tpu.memory_space<vmem>>, vector<1x4x32x40xbf16>
    %183 = vector.shape_cast %182 : vector<1x4x32x40xbf16> to vector<4x32x40xbf16>
    "tpu.trace_start"() <{level = 10 : i32, message = "hsd,hde->hse"}> : () -> ()
    %cst_62 = arith.constant dense<0.000000e+00> : vector<4x8x40xf32>
    %184 = tpu.matmul %181, %183, %cst_62 {dimension_numbers = #tpu.dot_dimension_numbers<[2], [1], [1], [2], [0, 0, 0, 1, 1, 2], [0], [0]>} : vector<4x8x32xbf16>, vector<4x32x40xbf16>, vector<4x8x40xf32> -> vector<4x8x40xf32>
    "tpu.trace_stop"() : () -> ()
    %185 = vector.extract_strided_slice %184 {offsets = [0, 0, 0], sizes = [4, 8, 8], strides = [1, 1, 1]} : vector<4x8x40xf32> to vector<4x8x8xf32>
    %186 = vector.extract_strided_slice %184 {offsets = [0, 0, 8], sizes = [4, 8, 8], strides = [1, 1, 1]} : vector<4x8x40xf32> to vector<4x8x8xf32>
    %187 = vector.extract_strided_slice %184 {offsets = [0, 0, 16], sizes = [4, 8, 8], strides = [1, 1, 1]} : vector<4x8x40xf32> to vector<4x8x8xf32>
    %188 = vector.extract_strided_slice %184 {offsets = [0, 0, 24], sizes = [4, 8, 8], strides = [1, 1, 1]} : vector<4x8x40xf32> to vector<4x8x8xf32>
    %189 = vector.extract_strided_slice %184 {offsets = [0, 0, 32], sizes = [4, 8, 8], strides = [1, 1, 1]} : vector<4x8x40xf32> to vector<4x8x8xf32>
    %190 = arith.mulf %185, %185 : vector<4x8x8xf32>
    %cst_63 = arith.constant dense<0.000000e+00> : vector<4x8xf32>
    %191 = vector.multi_reduction <add>, %190, %cst_63 [2] : vector<4x8x8xf32> to vector<4x8xf32>
    %192 = vector.shape_cast %191 : vector<4x8xf32> to vector<4x8x1xf32>
    %193 = vector.extract_strided_slice %192 {offsets = [0, 0, 0], sizes = [1, 8, 1], strides = [1, 1, 1]} : vector<4x8x1xf32> to vector<1x8x1xf32>
    %194 = vector.shape_cast %193 : vector<1x8x1xf32> to vector<8x1xf32>
    %195 = vector.extract_strided_slice %192 {offsets = [1, 0, 0], sizes = [1, 8, 1], strides = [1, 1, 1]} : vector<4x8x1xf32> to vector<1x8x1xf32>
    %196 = vector.shape_cast %195 : vector<1x8x1xf32> to vector<8x1xf32>
    %197 = arith.addf %194, %196 : vector<8x1xf32>
    %198 = vector.extract_strided_slice %192 {offsets = [2, 0, 0], sizes = [1, 8, 1], strides = [1, 1, 1]} : vector<4x8x1xf32> to vector<1x8x1xf32>
    %199 = vector.shape_cast %198 : vector<1x8x1xf32> to vector<8x1xf32>
    %200 = arith.addf %197, %199 : vector<8x1xf32>
    %201 = vector.extract_strided_slice %192 {offsets = [3, 0, 0], sizes = [1, 8, 1], strides = [1, 1, 1]} : vector<4x8x1xf32> to vector<1x8x1xf32>
    %202 = vector.shape_cast %201 : vector<1x8x1xf32> to vector<8x1xf32>
    %203 = arith.addf %200, %202 : vector<8x1xf32>
    %cst_64 = arith.constant 3.125000e-02 : f32
    %204 = vector.broadcast %cst_64 : f32 to vector<8x1xf32>
    %205 = arith.mulf %203, %204 : vector<8x1xf32>
    %cst_65 = arith.constant 1.1920929E-7 : f32
    %206 = vector.broadcast %cst_65 : f32 to vector<8x1xf32>
    %207 = arith.addf %205, %206 : vector<8x1xf32>
    %208 = math.rsqrt %207 : vector<8x1xf32>
    %209 = arith.mulf %187, %187 : vector<4x8x8xf32>
    %cst_66 = arith.constant dense<0.000000e+00> : vector<4x8xf32>
    %210 = vector.multi_reduction <add>, %209, %cst_66 [2] : vector<4x8x8xf32> to vector<4x8xf32>
    %211 = vector.shape_cast %210 : vector<4x8xf32> to vector<4x8x1xf32>
    %212 = vector.extract_strided_slice %211 {offsets = [0, 0, 0], sizes = [1, 8, 1], strides = [1, 1, 1]} : vector<4x8x1xf32> to vector<1x8x1xf32>
    %213 = vector.shape_cast %212 : vector<1x8x1xf32> to vector<8x1xf32>
    %214 = vector.extract_strided_slice %211 {offsets = [1, 0, 0], sizes = [1, 8, 1], strides = [1, 1, 1]} : vector<4x8x1xf32> to vector<1x8x1xf32>
    %215 = vector.shape_cast %214 : vector<1x8x1xf32> to vector<8x1xf32>
    %216 = arith.addf %213, %215 : vector<8x1xf32>
    %217 = vector.extract_strided_slice %211 {offsets = [2, 0, 0], sizes = [1, 8, 1], strides = [1, 1, 1]} : vector<4x8x1xf32> to vector<1x8x1xf32>
    %218 = vector.shape_cast %217 : vector<1x8x1xf32> to vector<8x1xf32>
    %219 = arith.addf %216, %218 : vector<8x1xf32>
    %220 = vector.extract_strided_slice %211 {offsets = [3, 0, 0], sizes = [1, 8, 1], strides = [1, 1, 1]} : vector<4x8x1xf32> to vector<1x8x1xf32>
    %221 = vector.shape_cast %220 : vector<1x8x1xf32> to vector<8x1xf32>
    %222 = arith.addf %219, %221 : vector<8x1xf32>
    %cst_67 = arith.constant 3.125000e-02 : f32
    %223 = vector.broadcast %cst_67 : f32 to vector<8x1xf32>
    %224 = arith.mulf %222, %223 : vector<8x1xf32>
    %cst_68 = arith.constant 1.1920929E-7 : f32
    %225 = vector.broadcast %cst_68 : f32 to vector<8x1xf32>
    %226 = arith.addf %224, %225 : vector<8x1xf32>
    %227 = math.rsqrt %226 : vector<8x1xf32>
    %228 = vector.shape_cast %12 : vector<8x8xf32> to vector<1x8x8xf32>
    %229 = vector.broadcast %228 : vector<1x8x8xf32> to vector<4x8x8xf32>
    %230 = arith.mulf %185, %229 : vector<4x8x8xf32>
    %231 = vector.shape_cast %13 : vector<8x8xf32> to vector<1x8x8xf32>
    %232 = vector.broadcast %231 : vector<1x8x8xf32> to vector<4x8x8xf32>
    %233 = arith.mulf %186, %232 : vector<4x8x8xf32>
    %234 = arith.addf %230, %233 : vector<4x8x8xf32>
    %235 = vector.shape_cast %208 : vector<8x1xf32> to vector<1x8x1xf32>
    %236 = vector.broadcast %235 : vector<1x8x1xf32> to vector<4x8x8xf32>
    %237 = arith.mulf %234, %236 : vector<4x8x8xf32>
    %238 = vector.shape_cast %14 : vector<8x8xf32> to vector<1x8x8xf32>
    %239 = vector.broadcast %238 : vector<1x8x8xf32> to vector<4x8x8xf32>
    %240 = arith.mulf %187, %239 : vector<4x8x8xf32>
    %241 = vector.shape_cast %15 : vector<8x8xf32> to vector<1x8x8xf32>
    %242 = vector.broadcast %241 : vector<1x8x8xf32> to vector<4x8x8xf32>
    %243 = arith.mulf %188, %242 : vector<4x8x8xf32>
    %244 = arith.addf %240, %243 : vector<4x8x8xf32>
    %245 = vector.shape_cast %227 : vector<8x1xf32> to vector<1x8x1xf32>
    %246 = vector.broadcast %245 : vector<1x8x1xf32> to vector<4x8x8xf32>
    %247 = arith.mulf %244, %246 : vector<4x8x8xf32>
    %248 = arith.truncf %237 : vector<4x8x8xf32> to vector<4x8x8xbf16>
    %249 = arith.truncf %247 : vector<4x8x8xf32> to vector<4x8x8xbf16>
    "tpu.trace_start"() <{level = 10 : i32, message = "hqe,hke->hqk"}> : () -> ()
    %cst_69 = arith.constant dense<0.000000e+00> : vector<4x8x8xf32>
    %250 = tpu.matmul %248, %249, %cst_69 {dimension_numbers = #tpu.dot_dimension_numbers<[2], [2], [1], [1], [0, 0, 0, 1, 1, 1], [0], [0]>} : vector<4x8x8xbf16>, vector<4x8x8xbf16>, vector<4x8x8xf32> -> vector<4x8x8xf32>
    %cst_70 = arith.constant -1.000000e+30 : f32
    "tpu.trace_stop"() : () -> ()
    %251 = vector.shape_cast %19 : vector<1x8x8xi1> to vector<1x8x8xi1>
    %252 = vector.broadcast %251 : vector<1x8x8xi1> to vector<4x8x8xi1>
    %253 = vector.broadcast %cst_70 : f32 to vector<4x8x8xf32>
    %254 = arith.select %252, %250, %253 : vector<4x8x8xi1>, vector<4x8x8xf32>
    %cst_71 = arith.constant dense<0xFF800000> : vector<4x8xf32>
    %255 = vector.multi_reduction <maximumf>, %254, %cst_71 [2] : vector<4x8x8xf32> to vector<4x8xf32>
    %256 = vector.shape_cast %255 : vector<4x8xf32> to vector<4x8x1xf32>
    %257 = vector.broadcast %256 : vector<4x8x1xf32> to vector<4x8x8xf32>
    %258 = arith.subf %254, %257 : vector<4x8x8xf32>
    %259 = math.exp %258 : vector<4x8x8xf32>
    %cst_72 = arith.constant dense<0.000000e+00> : vector<4x8xf32>
    %260 = vector.multi_reduction <add>, %259, %cst_72 [2] : vector<4x8x8xf32> to vector<4x8xf32>
    %261 = vector.shape_cast %260 : vector<4x8xf32> to vector<4x8x1xf32>
    %262 = arith.truncf %259 : vector<4x8x8xf32> to vector<4x8x8xbf16>
    %263 = arith.truncf %189 : vector<4x8x8xf32> to vector<4x8x8xbf16>
    "tpu.trace_start"() <{level = 10 : i32, message = "hqk,hke->hqe"}> : () -> ()
    %cst_73 = arith.constant dense<0.000000e+00> : vector<4x8x8xf32>
    %264 = tpu.matmul %262, %263, %cst_73 {dimension_numbers = #tpu.dot_dimension_numbers<[2], [1], [1], [2], [0, 0, 0, 1, 1, 2], [0], [0]>} : vector<4x8x8xbf16>, vector<4x8x8xbf16>, vector<4x8x8xf32> -> vector<4x8x8xf32>
    "tpu.trace_stop"() : () -> ()
    %265 = tpu.reciprocal %261 {approx = true} : vector<4x8x1xf32> -> vector<4x8x1xf32>
    %266 = vector.broadcast %265 : vector<4x8x1xf32> to vector<4x8x8xf32>
    %267 = arith.mulf %264, %266 : vector<4x8x8xf32>
    %268 = arith.truncf %267 : vector<4x8x8xf32> to vector<4x8x8xbf16>
    %c1_74 = arith.constant 1 : index
    %c0_75 = arith.constant 0 : index
    %c0_76 = arith.constant 0 : index
    %c0_77 = arith.constant 0 : index
    %269 = vector.load %arg7[%c1_74, %c0_75, %c0_76, %c0_77] : memref<2x4x8x32xbf16, #tpu.memory_space<vmem>>, vector<1x4x8x32xbf16>
    %270 = vector.shape_cast %269 : vector<1x4x8x32xbf16> to vector<4x8x32xbf16>
    "tpu.trace_start"() <{level = 10 : i32, message = "hse,hed->hsd"}> : () -> ()
    %cst_78 = arith.constant dense<0.000000e+00> : vector<4x8x32xf32>
    %271 = tpu.matmul %268, %270, %cst_78 {dimension_numbers = #tpu.dot_dimension_numbers<[2], [1], [1], [2], [0, 0, 0, 1, 1, 2], [0], [0]>} : vector<4x8x8xbf16>, vector<4x8x32xbf16>, vector<4x8x32xf32> -> vector<4x8x32xf32>
    "tpu.trace_stop"() : () -> ()
    %272 = vector.extract_strided_slice %271 {offsets = [0, 0, 0], sizes = [1, 8, 32], strides = [1, 1, 1]} : vector<4x8x32xf32> to vector<1x8x32xf32>
    %273 = vector.shape_cast %272 : vector<1x8x32xf32> to vector<8x32xf32>
    %274 = vector.extract_strided_slice %271 {offsets = [1, 0, 0], sizes = [1, 8, 32], strides = [1, 1, 1]} : vector<4x8x32xf32> to vector<1x8x32xf32>
    %275 = vector.shape_cast %274 : vector<1x8x32xf32> to vector<8x32xf32>
    %276 = arith.addf %273, %275 : vector<8x32xf32>
    %277 = vector.extract_strided_slice %271 {offsets = [2, 0, 0], sizes = [1, 8, 32], strides = [1, 1, 1]} : vector<4x8x32xf32> to vector<1x8x32xf32>
    %278 = vector.shape_cast %277 : vector<1x8x32xf32> to vector<8x32xf32>
    %279 = arith.addf %276, %278 : vector<8x32xf32>
    %280 = vector.extract_strided_slice %271 {offsets = [3, 0, 0], sizes = [1, 8, 32], strides = [1, 1, 1]} : vector<4x8x32xf32> to vector<1x8x32xf32>
    %281 = vector.shape_cast %280 : vector<1x8x32xf32> to vector<8x32xf32>
    %282 = arith.addf %279, %281 : vector<8x32xf32>
    %c1_79 = arith.constant 1 : index
    %c0_80 = arith.constant 0 : index
    %c0_81 = arith.constant 0 : index
    %283 = vector.load %arg8[%c1_79, %c0_80, %c0_81] : memref<2x1x32xf32, #tpu.memory_space<vmem>>, vector<1x1x32xf32>
    %284 = vector.shape_cast %283 : vector<1x1x32xf32> to vector<1x32xf32>
    %285 = vector.broadcast %284 : vector<1x32xf32> to vector<8x32xf32>
    %286 = arith.addf %282, %285 : vector<8x32xf32>
    %287 = arith.truncf %178 : vector<8x32xf32> to vector<8x32xbf16>
    %c1_82 = arith.constant 1 : index
    %c0_83 = arith.constant 0 : index
    %c0_84 = arith.constant 0 : index
    %288 = vector.load %arg9[%c1_82, %c0_83, %c0_84] : memref<2x32x128xbf16, #tpu.memory_space<vmem>>, vector<1x32x128xbf16>
    %289 = vector.shape_cast %288 : vector<1x32x128xbf16> to vector<32x128xbf16>
    %cst_85 = arith.constant dense<0.000000e+00> : vector<8x128xf32>
    %290 = tpu.matmul %287, %289, %cst_85 {dimension_numbers = #tpu.dot_dimension_numbers<[1], [0], [0], [1], [0, 0, 1, 1], [], []>} : vector<8x32xbf16>, vector<32x128xbf16>, vector<8x128xf32> -> vector<8x128xf32>
    %c1_86 = arith.constant 1 : index
    %c0_87 = arith.constant 0 : index
    %c0_88 = arith.constant 0 : index
    %291 = vector.load %arg10[%c1_86, %c0_87, %c0_88] : memref<2x1x128xf32, #tpu.memory_space<vmem>>, vector<1x1x128xf32>
    %292 = vector.shape_cast %291 : vector<1x1x128xf32> to vector<1x128xf32>
    %293 = vector.broadcast %292 : vector<1x128xf32> to vector<8x128xf32>
    %294 = arith.addf %290, %293 : vector<8x128xf32>
    %295 = vector.extract_strided_slice %294 {offsets = [0, 0], sizes = [8, 64], strides = [1, 1]} : vector<8x128xf32> to vector<8x64xf32>
    %296 = vector.extract_strided_slice %294 {offsets = [0, 64], sizes = [8, 64], strides = [1, 1]} : vector<8x128xf32> to vector<8x64xf32>
    %297 = arith.mulf %295, %296 : vector<8x64xf32>
    %cst_89 = arith.constant 0.000000e+00 : f32
    %298 = vector.broadcast %cst_89 : f32 to vector<8x64xf32>
    %299 = arith.subf %298, %296 : vector<8x64xf32>
    %300 = math.exp %299 : vector<8x64xf32>
    %cst_90 = arith.constant 1.000000e+00 : f32
    %301 = vector.broadcast %cst_90 : f32 to vector<8x64xf32>
    %302 = arith.addf %301, %300 : vector<8x64xf32>
    %303 = tpu.reciprocal %302 {approx = true} : vector<8x64xf32> -> vector<8x64xf32>
    %304 = arith.mulf %297, %303 : vector<8x64xf32>
    %305 = arith.truncf %304 : vector<8x64xf32> to vector<8x64xbf16>
    %c1_91 = arith.constant 1 : index
    %c0_92 = arith.constant 0 : index
    %c0_93 = arith.constant 0 : index
    %306 = vector.load %arg11[%c1_91, %c0_92, %c0_93] : memref<2x64x32xbf16, #tpu.memory_space<vmem>>, vector<1x64x32xbf16>
    %307 = vector.shape_cast %306 : vector<1x64x32xbf16> to vector<64x32xbf16>
    %cst_94 = arith.constant dense<0.000000e+00> : vector<8x32xf32>
    %308 = tpu.matmul %305, %307, %cst_94 {dimension_numbers = #tpu.dot_dimension_numbers<[1], [0], [0], [1], [0, 0, 1, 1], [], []>} : vector<8x64xbf16>, vector<64x32xbf16>, vector<8x32xf32> -> vector<8x32xf32>
    %c1_95 = arith.constant 1 : index
    %c0_96 = arith.constant 0 : index
    %c0_97 = arith.constant 0 : index
    %309 = vector.load %arg12[%c1_95, %c0_96, %c0_97] : memref<2x1x32xf32, #tpu.memory_space<vmem>>, vector<1x1x32xf32>
    %310 = vector.shape_cast %309 : vector<1x1x32xf32> to vector<1x32xf32>
    %311 = vector.broadcast %310 : vector<1x32xf32> to vector<8x32xf32>
    %312 = arith.addf %308, %311 : vector<8x32xf32>
    %c1_98 = arith.constant 1 : index
    %313 = memref.load %arg14[%c1_98] : memref<2xf32, #tpu.memory_space<smem>>
    %314 = vector.broadcast %313 : f32 to vector<8x32xf32>
    %315 = arith.mulf %314, %168 : vector<8x32xf32>
    %316 = arith.addf %315, %312 : vector<8x32xf32>
    %317 = arith.addf %316, %286 : vector<8x32xf32>
    %318 = vector.extract_strided_slice %317 {offsets = [7, 0], sizes = [1, 32], strides = [1, 1]} : vector<8x32xf32> to vector<1x32xf32>
    %319 = arith.mulf %318, %318 : vector<1x32xf32>
    %cst_99 = arith.constant dense<0.000000e+00> : vector<1xf32>
    %320 = vector.multi_reduction <add>, %319, %cst_99 [1] : vector<1x32xf32> to vector<1xf32>
    %321 = vector.shape_cast %320 : vector<1xf32> to vector<1x1xf32>
    %cst_100 = arith.constant 3.200000e+01 : f32
    %322 = vector.broadcast %cst_100 : f32 to vector<1x1xf32>
    %323 = arith.divf %321, %322 : vector<1x1xf32>
    %cst_101 = arith.constant 1.1920929E-7 : f32
    %324 = vector.broadcast %cst_101 : f32 to vector<1x1xf32>
    %325 = arith.addf %323, %324 : vector<1x1xf32>
    %326 = math.rsqrt %325 : vector<1x1xf32>
    %327 = vector.broadcast %326 : vector<1x1xf32> to vector<1x32xf32>
    %328 = arith.mulf %318, %327 : vector<1x32xf32>
    %329 = arith.truncf %328 : vector<1x32xf32> to vector<1x32xbf16>
    %c0_102 = arith.constant 0 : index
    %c0_103 = arith.constant 0 : index
    %330 = vector.load %arg13[%c0_102, %c0_103] : memref<32x128xbf16, #tpu.memory_space<vmem>>, vector<32x128xbf16>
    %cst_104 = arith.constant dense<0.000000e+00> : vector<1x128xf32>
    %331 = tpu.matmul %329, %330, %cst_104 {dimension_numbers = #tpu.dot_dimension_numbers<[1], [0], [0], [1], [0, 0, 1, 1], [], []>} : vector<1x32xbf16>, vector<32x128xbf16>, vector<1x128xf32> -> vector<1x128xf32>
    %cst_105 = arith.constant 0.0333333351 : f32
    %332 = vector.broadcast %cst_105 : f32 to vector<1x128xf32>
    %333 = arith.mulf %331, %332 : vector<1x128xf32>
    %334 = math.tanh %333 : vector<1x128xf32>
    %cst_106 = arith.constant 3.000000e+01 : f32
    %335 = vector.broadcast %cst_106 : f32 to vector<1x128xf32>
    %336 = arith.mulf %335, %334 : vector<1x128xf32>
    %c0_107 = arith.constant 0 : index
    %c0_108 = arith.constant 0 : index
    %c0_109 = arith.constant 0 : index
    %337 = vector.load %arg15[%c0_107, %c0_108, %c0_109] : memref<1x1x128xf32, #tpu.memory_space<vmem>>, vector<1x1x128xf32>
    %338 = vector.shape_cast %337 : vector<1x1x128xf32> to vector<1x128xf32>
    %339 = vector.shape_cast %336 : vector<1x128xf32> to vector<1x1x128xf32>
    tpu.vector_store %arg15[%c0_107, %c0_108, %c0_109], %339 {strides = array<i32>} : memref<1x1x128xf32, #tpu.memory_space<vmem>>, vector<1x1x128xf32>,
    return
  }
  func.func @transform_0(%arg0: i32) -> (i32, i32, i32) {
    %c0_i32 = arith.constant 0 : i32
    %c0_i32_0 = arith.constant 0 : i32
    %c0_i32_1 = arith.constant 0 : i32
    return %arg0, %c0_i32, %c0_i32_0 : i32, i32, i32
  }
  func.func @transform_1(%arg0: i32) -> (i32, i32) {
    %c0_i32 = arith.constant 0 : i32
    %c0_i32_0 = arith.constant 0 : i32
    %c0_i32_1 = arith.constant 0 : i32
    return %c0_i32, %c0_i32_0 : i32, i32
  }
  func.func @transform_2(%arg0: i32) -> (i32, i32) {
    %c0_i32 = arith.constant 0 : i32
    %c0_i32_0 = arith.constant 0 : i32
    %c0_i32_1 = arith.constant 0 : i32
    return %c0_i32, %c0_i32_0 : i32, i32
  }
  func.func @transform_3(%arg0: i32) -> (i32, i32) {
    %c0_i32 = arith.constant 0 : i32
    %c0_i32_0 = arith.constant 0 : i32
    %c0_i32_1 = arith.constant 0 : i32
    return %c0_i32, %c0_i32_0 : i32, i32
  }
  func.func @transform_4(%arg0: i32) -> (i32, i32) {
    %c0_i32 = arith.constant 0 : i32
    %c0_i32_0 = arith.constant 0 : i32
    %c0_i32_1 = arith.constant 0 : i32
    return %c0_i32, %c0_i32_0 : i32, i32
  }
  func.func @transform_5(%arg0: i32) -> (i32, i32, i32, i32) {
    %c0_i32 = arith.constant 0 : i32
    %c0_i32_0 = arith.constant 0 : i32
    %c0_i32_1 = arith.constant 0 : i32
    %c0_i32_2 = arith.constant 0 : i32
    %c0_i32_3 = arith.constant 0 : i32
    return %c0_i32, %c0_i32_0, %c0_i32_1, %c0_i32_2 : i32, i32, i32, i32
  }
  func.func @transform_6(%arg0: i32) -> (i32, i32, i32, i32) {
    %c0_i32 = arith.constant 0 : i32
    %c0_i32_0 = arith.constant 0 : i32
    %c0_i32_1 = arith.constant 0 : i32
    %c0_i32_2 = arith.constant 0 : i32
    %c0_i32_3 = arith.constant 0 : i32
    return %c0_i32, %c0_i32_0, %c0_i32_1, %c0_i32_2 : i32, i32, i32, i32
  }
  func.func @transform_7(%arg0: i32) -> (i32, i32, i32) {
    %c0_i32 = arith.constant 0 : i32
    %c0_i32_0 = arith.constant 0 : i32
    %c0_i32_1 = arith.constant 0 : i32
    %c0_i32_2 = arith.constant 0 : i32
    return %c0_i32, %c0_i32_0, %c0_i32_1 : i32, i32, i32
  }
  func.func @transform_8(%arg0: i32) -> (i32, i32, i32) {
    %c0_i32 = arith.constant 0 : i32
    %c0_i32_0 = arith.constant 0 : i32
    %c0_i32_1 = arith.constant 0 : i32
    %c0_i32_2 = arith.constant 0 : i32
    return %c0_i32, %c0_i32_0, %c0_i32_1 : i32, i32, i32
  }
  func.func @transform_9(%arg0: i32) -> (i32, i32, i32) {
    %c0_i32 = arith.constant 0 : i32
    %c0_i32_0 = arith.constant 0 : i32
    %c0_i32_1 = arith.constant 0 : i32
    %c0_i32_2 = arith.constant 0 : i32
    return %c0_i32, %c0_i32_0, %c0_i32_1 : i32, i32, i32
  }
  func.func @transform_10(%arg0: i32) -> (i32, i32, i32) {
    %c0_i32 = arith.constant 0 : i32
    %c0_i32_0 = arith.constant 0 : i32
    %c0_i32_1 = arith.constant 0 : i32
    %c0_i32_2 = arith.constant 0 : i32
    return %c0_i32, %c0_i32_0, %c0_i32_1 : i32, i32, i32
  }
  func.func @transform_11(%arg0: i32) -> (i32, i32, i32) {
    %c0_i32 = arith.constant 0 : i32
    %c0_i32_0 = arith.constant 0 : i32
    %c0_i32_1 = arith.constant 0 : i32
    %c0_i32_2 = arith.constant 0 : i32
    return %c0_i32, %c0_i32_0, %c0_i32_1 : i32, i32, i32
  }
  func.func @transform_12(%arg0: i32) -> (i32, i32) {
    %c0_i32 = arith.constant 0 : i32
    %c0_i32_0 = arith.constant 0 : i32
    %c0_i32_1 = arith.constant 0 : i32
    return %c0_i32, %c0_i32_0 : i32, i32
  }
  func.func @transform_13(%arg0: i32) -> i32 {
    %c0_i32 = arith.constant 0 : i32
    %c0_i32_0 = arith.constant 0 : i32
    return %c0_i32 : i32
  }
  func.func @transform_14(%arg0: i32) -> (i32, i32, i32) {
    %c0_i32 = arith.constant 0 : i32
    %c0_i32_0 = arith.constant 0 : i32
    %c0_i32_1 = arith.constant 0 : i32
    return %arg0, %c0_i32, %c0_i32_0 : i32, i32, i32
  }
}

</mosaic_0001>

<bundles_post_ra>
// kernel: tpu_custom_call.1
= control target key start
LH: loop header
LB: loop body
LE: loop exit
PB: predicated region body
PF: predicated region fallthrough
CT: control target
= control target key end

     0   :  { %s4962_s0 = inlined_call_operand.vmem [shape: f32[2,8,32], index: 0, kind: input, shape index: {}]   ;;  %s4963_s1 = inlined_call_operand.hbm [shape: f32[8,8], index: 1, kind: input, shape index: {}]   ;;  %s4964_s2 = inlined_call_operand.hbm [shape: f32[8,8], index: 2, kind: input, shape index: {}]   ;;  %s4965_s3 = inlined_call_operand.hbm [shape: f32[8,8], index: 3, kind: input, shape index: {}]   ;;  %s4966_s4 = inlined_call_operand.hbm [shape: f32[8,8], index: 4, kind: input, shape index: {}]   ;;  %s4967_s5 = inlined_call_operand.hbm [shape: bf16[2,4,32,40], index: 5, kind: input, shape index: {}]   ;;  %s4968_s6 = inlined_call_operand.vmem [shape: bf16[2,4,8,32], index: 6, kind: input, shape index: {}]   ;;  %s4969_s7 = inlined_call_operand.vmem [shape: f32[2,1,32], index: 7, kind: input, shape index: {}]   ;;  %s4970_s8 = inlined_call_operand.vmem [shape: bf16[2,32,128], index: 8, kind: input, shape index: {}]   ;;  %s4971_s9 = inlined_call_operand.vmem [shape: f32[2,1,128], index: 9, kind: input, shape index: {}]   ;;  %s4972_s10 = inlined_call_operand.vmem [shape: bf16[2,64,32], index: 10, kind: input, shape index: {}]   ;;  %s4973_s11 = inlined_call_operand.vmem [shape: f32[2,1,32], index: 11, kind: input, shape index: {}]   ;;  %s4974_s12 = inlined_call_operand.vmem [shape: bf16[32,128], index: 12, kind: input, shape index: {}]   ;;  %s4975_s13 = inlined_call_operand.vmem [shape: f32[2], index: 13, kind: input, shape index: {}]   ;;  %s4976_s14 = inlined_call_operand.hbm [shape: f32[2,1,128], index: 14, kind: output, shape index: {}]  }
   0x1   :  { %4989 = sst [smem:[#allocation26_spill]] %s4964_s2 }
   0x2   :  { %4990 = sst [smem:[#allocation27_spill]] %s4976_s14 }
   0x3   :  { %19 = vsyncpa [#allocation3], 0 }
   0x4   :  { %20 = vsyncpa [#allocation7], 0 }
   0x5   :  { %21 = vsyncpa [#allocation10], 0 }
   0x6   :  { %22 = vsyncpa [#allocation5], 0 }
   0x7   :  { %23 = vsyncpa [#allocation4], 0 }
   0x8   :  { %25 = vsyncpa [#allocation4 + $0x1], 0  ;;  %s4180_s29 = smov 0   ;;  %s4182_s30 = smov 0  }
   0x9   :  { %s4184_s15 = smov 0   ;;  %s4186_s16 = smov 0  }
   0xa LB: > { %4991 = sst [smem:[#allocation19_spill]] %s4073_s29  ;;  %s4201_s17 = sadd.s32 4294967295, %s4085_s16   ;;  %s4085_s16 = sphi %s4186_s16, %s5022_s16   ;;  %s4081_s15 = sphi %s4184_s15, %s5024_s15   ;;  %s4077_s30 = sphi %s4182_s30, %s5026_s30   ;;  %s4073_s29 = sphi %s4180_s29, %s5025_s29  }
   0xb   : > { %4992 = sst [smem:[#allocation20_spill]] %s4081_s15  ;;  %s3155_s18 = sadd.s32 4294967294, %s4085_s16  }
   0xc   : > { %4993 = sst [smem:[#allocation21_spill]] %s4085_s16  ;;  %s4205_s19 = sadd.s32 1, %s4085_s16  }
   0xd   : > { %4994 = sst [smem:[#allocation22_spill]] %s4205_s19  ;;  %s337_s20 = sadd.s32 1, %s4081_s15 }
   0xe   : > { %s334_s21 = ssub.s32 %s4085_s16, %s4205_s19  ;;  %p347_p0 = scmp.ne.s32.totalorder %s4081_s15, %s4077_s30 }
   0xf   : > { %p335_p1 = scmp.eq.s32.totalorder %s334_s21, 0  ;;  %p348_p2 = scmp.eq.s32.totalorder %s4201_s17, 1 }
  0x10   : > { %p353_p3 = scmp.ne.s32.totalorder %s4077_s30, %s4073_s29  ;;  %p354_p4 = scmp.eq.s32.totalorder %s3155_s18, 1 }
  0x11   : > { %s4216_s22 = scalar_select %p335_p1, %s4081_s15, %s337_s20  }
  0x12   : > { %p4218_p5 = por %p348_p2, %p347_p0  ;;  %p4222_p6 = por %p354_p4, %p353_p3 }
  0x13   : > { %4995 = sst [smem:[#allocation23_spill]] %s4216_s22  ;;  %p3156_p7 = scmp.ge.s32.totalorder %s4085_s16, 1 }
  0x14   : > { %s4996_s23 = scalar_select %p4218_p5, 1, 0 }
  0x15   : > { %s4998_s24 = scalar_select %p4222_p6, 1, 0 }
  0x16   : > { %4997 = sst [smem:[#allocation24_spill]] %s4996_s23  ;;  %p361_p8 = scmp.lt.s32.totalorder %s4085_s16, 3 }
  0x17   : > { %4999 = sst [smem:[#allocation25_spill]] %s4998_s24  ;;  %p4983_p9 = scmp.eq.s32.totalorder %s4201_s17, 0 }
  0x18   : > { %p4229_p10 = pnand %p3156_p7, %p361_p8  ;;  %s4087_s26 = smov [#allocation6]  }
  0x19   : > { %s385_s27 = sshll.u32 %s4087_s26, 4  ;;  %s4088_s28 = smov [#allocation9]   ;;  %s386_s27 = int_to_ptr.vmem [resolvable:$true] %s385_s27 }
  0x1a   : > { %s5000_s25 = scalar_select %p4229_p10, 1, 0 }
  0x1b   : > { %p3679_p11 = pneg %p4229_p10  ;;  %s407_s18 = sshll.u32 %s4088_s28, 4  ;;  %s4241_s18 = int_to_ptr.vmem [resolvable:$true] %s407_s18 }
  0x1c   : > { %s4089_s21 = smov [#allocation2]   ;;  %s5002_s2 = sld [smem:[#allocation26_spill]] }
  0x1d   : > { %p4237_p12 = pnand %p4983_p9, %p3679_p11  ;;  %s374_s22 = sshll.u32 %s4089_s21, 4  ;;  %s4243_s22 = int_to_ptr.vmem [resolvable:$true] %s374_s22 }
  0x1f   : > { %p4253_p0 = pneg %p4237_p12 }
  0x22   : > { %s3852_s26 = scalar_lea.hbm %s5002_s2, 128 }
  0x23   : > { %p3853_p13 = scmp.ne.s32.totalorder %s5002_s2, %s3852_s26  ;;  %p3859_p3 = scmp.lt.u32.totalorder %s3852_s26, %s5002_s2 }
  0x25   : > { %p3855_p1 = pnand %p4253_p0, %p3853_p13 }
  0x27   : > { %p3856_p2 = pneg %p3855_p1 }
  0x29   : > { %p3861_p4 = pnand %p3859_p3, %p3856_p2 }
  0x2b   : > { %3864 = shalt.err (!%p3861_p4)
}
  0x2c   : > { %s3865_s15 = scalar_lea.vmem %s386_s27, 128  ;;  %p3873_p9 = scmp.lt.s32.totalorder %s386_s27, %s386_s27 }
  0x2d   : > { %p3866_p7 = scmp.ne.s32.totalorder %s386_s27, %s3865_s15  ;;  %p3874_p6 = scmp.lt.s32.totalorder %s3865_s15, %s3865_s15 }
  0x2f   : > { %p3868_p8 = pnand %p3866_p7, %p4253_p0  ;;  %p3875_p5 = por %p3874_p6, %p3873_p9 }
  0x31   : > { %p3869_p11 = pneg %p3868_p8 }
  0x33   : > { %p3876_p10 = pnand %p3875_p5, %p3869_p11 }
  0x35   : > { %3879 = shalt.err (!%p3876_p10)
}
  0x36   : > { %3685 = dma.hbm_to_vmem [thread:$0]  (!%p4237_p12), %s5002_s2, 128, %s386_s27, [#allocation7]  }
  0x37   : > { %s3880_s26 = scalar_lea.hbm %s4966_s4, 128 }
  0x38   : > { %p3881_p13 = scmp.ne.s32.totalorder %s4966_s4, %s3880_s26  ;;  %p3887_p5 = scmp.lt.u32.totalorder %s3880_s26, %s4966_s4 }
  0x3a   : > { %p3883_p1 = pnand %p3881_p13, %p4253_p0 }
  0x3c   : > { %p3884_p6 = pneg %p3883_p1 }
  0x3e   : > { %p3889_p9 = pnand %p3887_p5, %p3884_p6 }
  0x40   : > { %3892 = shalt.err (!%p3889_p9)
}
  0x41   : > { %s3893_s27 = scalar_lea.vmem %s4241_s18, 128  ;;  %p3901_p4 = scmp.lt.s32.totalorder %s4241_s18, %s4241_s18 }
  0x42   : > { %p3894_p10 = scmp.ne.s32.totalorder %s4241_s18, %s3893_s27  ;;  %p3902_p7 = scmp.lt.s32.totalorder %s3893_s27, %s3893_s27 }
  0x44   : > { %p3896_p2 = pnand %p3894_p10, %p4253_p0  ;;  %p3903_p8 = por %p3902_p7, %p3901_p4 }
  0x46   : > { %p3897_p3 = pneg %p3896_p2 }
  0x48   : > { %p3904_p11 = pnand %p3903_p8, %p3897_p3 }
  0x4a   : > { %3907 = shalt.err (!%p3904_p11)
}
  0x4b   : > { %3691 = dma.hbm_to_vmem [thread:$0]  (!%p4237_p12), %s4966_s4, 128, %s4241_s18, [#allocation10]  }
  0x4c   : > { %s3908_s16 = scalar_lea.hbm %s4963_s1, 128 }
  0x4d   : > { %p3909_p13 = scmp.ne.s32.totalorder %s4963_s1, %s3908_s16  ;;  %p3915_p5 = scmp.lt.u32.totalorder %s3908_s16, %s4963_s1 }
  0x4f   : > { %p3911_p1 = pnand %p3909_p13, %p4253_p0 }
  0x51   : > { %p3912_p6 = pneg %p3911_p1 }
  0x53   : > { %p3917_p9 = pnand %p3915_p5, %p3912_p6 }
  0x55   : > { %3920 = shalt.err (!%p3917_p9)
}
  0x56   : > { %s3921_s18 = scalar_lea.vmem %s4243_s22, 128  ;;  %p3929_p4 = scmp.lt.s32.totalorder %s4243_s22, %s4243_s22 }
  0x57   : > { %p3922_p10 = scmp.ne.s32.totalorder %s4243_s22, %s3921_s18  ;;  %p3930_p7 = scmp.lt.s32.totalorder %s3921_s18, %s3921_s18 }
  0x59   : > { %p3924_p2 = pnand %p3922_p10, %p4253_p0  ;;  %p3931_p8 = por %p3930_p7, %p3929_p4 }
  0x5b   : > { %p3925_p3 = pneg %p3924_p2 }
  0x5d   : > { %p3932_p11 = pnand %p3931_p8, %p3925_p3 }
  0x5f   : > { %3935 = shalt.err (!%p3932_p11)
}
  0x60   : > { %3682 = dma.hbm_to_vmem [thread:$0]  (!%p4237_p12), %s4963_s1, 128, %s4243_s22, [#allocation3]  }
  0x61   : > { %s4090_s23 = smov [#allocation8]   ;;  %s4091_s19 = smov [#allocation11]  }
  0x62   : > { %s396_s29 = sshll.u32 %s4090_s23, 4  ;;  %s417_s16 = sshll.u32 %s4091_s19, 4  ;;  %s397_s29 = int_to_ptr.vmem [resolvable:$true] %s396_s29  ;;  %s418_s16 = int_to_ptr.vmem [resolvable:$true] %s417_s16 }
  0x63   : > { %s3936_s21 = scalar_lea.hbm %s4965_s3, 128 }
  0x64   : > { %p3937_p13 = scmp.ne.s32.totalorder %s4965_s3, %s3936_s21  ;;  %p3943_p5 = scmp.lt.u32.totalorder %s3936_s21, %s4965_s3 }
  0x66   : > { %p3939_p1 = pnand %p3937_p13, %p4253_p0 }
  0x68   : > { %p3940_p6 = pneg %p3939_p1 }
  0x6a   : > { %p3945_p9 = pnand %p3943_p5, %p3940_p6 }
  0x6c   : > { %3948 = shalt.err (!%p3945_p9)
}
  0x6d   : > { %s3949_s22 = scalar_lea.vmem %s397_s29, 128  ;;  %p3957_p4 = scmp.lt.s32.totalorder %s397_s29, %s397_s29 }
  0x6e   : > { %p3950_p10 = scmp.ne.s32.totalorder %s397_s29, %s3949_s22  ;;  %p3958_p7 = scmp.lt.s32.totalorder %s3949_s22, %s3949_s22 }
  0x70   : > { %p3952_p2 = pnand %p3950_p10, %p4253_p0  ;;  %p3959_p8 = por %p3958_p7, %p3957_p4 }
  0x72   : > { %p3953_p3 = pneg %p3952_p2 }
  0x74   : > { %p3960_p11 = pnand %p3959_p8, %p3953_p3 }
  0x76   : > { %3963 = shalt.err (!%p3960_p11)
}
  0x77   : > { %3688 = dma.hbm_to_vmem [thread:$0]  (!%p4237_p12), %s4965_s3, 128, %s397_s29, [#allocation7]  }
  0x78   : > { %s452_s24 = sshll.u32 %s4975_s13, 4  ;;  %s3964_s15 = scalar_lea.hbm %s4967_s5, 2048  ;;  %s453_s24 = int_to_ptr.vmem [resolvable:$true] %s452_s24 }
  0x79   : > { %p3965_p13 = scmp.ne.s32.totalorder %s4967_s5, %s3964_s15  ;;  %p3971_p5 = scmp.lt.u32.totalorder %s3964_s15, %s4967_s5 }
  0x7b   : > { %p3967_p1 = pnand %p3965_p13, %p4253_p0 }
  0x7d   : > { %p3968_p6 = pneg %p3967_p1 }
  0x7f   : > { %p3973_p9 = pnand %p3971_p5, %p3968_p6 }
  0x81   : > { %3976 = shalt.err (!%p3973_p9)
}
  0x82   : > { %s3977_s29 = scalar_lea.vmem %s418_s16, 2048  ;;  %p3985_p4 = scmp.lt.s32.totalorder %s418_s16, %s418_s16 }
  0x83   : > { %p3978_p10 = scmp.ne.s32.totalorder %s418_s16, %s3977_s29  ;;  %p3986_p7 = scmp.lt.s32.totalorder %s3977_s29, %s3977_s29 }
  0x85   : > { %p3980_p2 = pnand %p3978_p10, %p4253_p0  ;;  %p3987_p8 = por %p3986_p7, %p3985_p4 }
  0x87   : > { %p3981_p3 = pneg %p3980_p2 }
  0x89   : > { %p3988_p11 = pnand %p3987_p8, %p3981_p3 }
  0x8b   : > { %3991 = shalt.err (!%p3988_p11)
}
  0x8c   : > { %s4092_s23 = smov 64   ;;  %s4093_s2 = smov 4  }
  0x8d   : > { %3694 = dma.hbm_to_vmem [thread:$0]  (!%p4237_p12), %s4967_s5, 2048, %s418_s16, [#allocation10], %s4092_s23, %s4092_s23, %s4093_s2  }
  0x8e   : > { %s3992_s21 = scalar_lea.vmem %s453_s24, 16  ;;  %p4000_p5 = scmp.lt.s32.totalorder %s453_s24, %s453_s24 }
  0x8f   : > { %p3993_p13 = scmp.ne.s32.totalorder %s453_s24, %s3992_s21  ;;  %p4001_p9 = scmp.lt.s32.totalorder %s3992_s21, %s3992_s21 }
  0x91   : > { %p3995_p1 = pnand %p3993_p13, %p4253_p0  ;;  %p4002_p10 = por %p4001_p9, %p4000_p5 }
  0x93   : > { %p3996_p6 = pneg %p3995_p1 }
  0x95   : > { %p4003_p2 = pnand %p4002_p10, %p3996_p6 }
  0x97   : > { %4006 = shalt.err (!%p4003_p2)
}
  0x98   : > { %s4094_s15 = smov [#allocation12]   ;;  %p5004_p3 = scmp.ne.s32.totalorder %s5000_s25, 0 }
  0x99   : > { %3697 = dma.vmem_to_smem (!%p4237_p12), %s453_s24, 16, %s4094_s15, [#allocation5]  }
  0x9a   : > { %472 = sbr.rel (%p5004_p3) target bundleno = 4346 (0x10fa), region = 76  ;;  %p5005_p4 = scmp.eq.s32.totalorder (!%p5004_p3), %s4201_s17, 0 }
  0xa1   : > { %4052 = dma.done.wait (%p5005_p4), [#allocation3], 128   ;;  %p5006_p7 = pmov %p5005_p4 }
  0xa2   : > { %p5007_p0 = pmov %p5005_p4 }
  0xa3   : > { %4054 = vsyncadd (%p5006_p7), [#allocation3], 4294967168 }
  0xa4   : > { %4056 = dma.done.wait (%p5007_p0), [#allocation7], 256   ;;  %p5008_p8 = pmov %p5007_p0 }
  0xa5   : > { %p5009_p11 = pmov %p5007_p0 }
  0xa6   : > { %4058 = vsyncadd (%p5008_p8), [#allocation7], 4294967040 }
  0xa7   : > { %4060 = dma.done.wait (%p5009_p11), [#allocation10], 2176   ;;  %p5010_p12 = pmov %p5007_p0 }
  0xa8   : > { %p5011_p13 = pmov %p5007_p0 }
  0xa9   : > { %4062 = vsyncadd (%p5010_p12), [#allocation10], 4294965120 }
  0xaa   : > { %4064 = dma.done.wait (%p5011_p13), [#allocation5], 16   ;;  %p5012_p1 = pmov %p5007_p0 }
  0xac   : > { %4066 = vsyncadd (%p5012_p1), [#allocation5], 4294967280 }
  0xad   : > { %498 = sfence }
  0xae   : > { %p537_p6 = scmp.lt.s32.totalorder %s4201_s17, 1  ;;  %vm544_vm0 = vcmask 261120   ;;  %v3764_v10 = vld [vmem:[#allocation11] sm:$0xff]   ;;  %v3765_v11 = vld [vmem:[#allocation11 + $0x30] sm:$0xff]   ;;  %v4095_v12 = vmov 0.0   ;;  %v3766_v13 = vld [vmem:[#allocation11 + $0x8] sm:$0xff]  }
  0xaf   : > { %3359 = vmatprep.subr.bf16.mxu0 %v4095_v12  ;;  %3383 = vmatprep.subr.bf16.mxu1 %v4095_v12  ;;  %v3767_v14 = vld [vmem:[#allocation11 + $0x38] sm:$0xff]   ;;  %vm4096_vm1 = vmmov 0   ;;  %v3768_v20 = vld [vmem:[#allocation11 + $0x10] sm:$0xff]   ;;  %v3770_v23 = vld [vmem:[#allocation11 + $0x20] sm:$0xff]   ;;  %s4097_s18 = smov 112   ;;  %s4098_s27 = smov 24  }
  0xb0   : > { %s538_s25 = scalar_select %p537_p6, %s4201_s17, 1  ;;  %3360 = vmatpush3.bf16.msra.mxu0 %v3764_v10  ;;  %3384 = vmatpush3.bf16.msra.mxu1 %v3765_v11  ;;  %v3769_v22 = vld [vmem:[#allocation11 + $0x18] sm:$0xff]   ;;  %v3771_v24 = vld [vmem:[#allocation11 + $0x28] sm:$0xff]   ;;  %vm802_vm2 = vcmask 64512   ;;  %v555_v53 = vld [vmem:[#allocation8] sm:$0xff]  ;;  %vm1191_vm4 = vcmask 1043456  }
  0xb1   : > { %3361 = vmatprep.subr.bf16.mxu0 %v4095_v12  ;;  %3385 = vmatprep.subr.bf16.mxu1 %v4095_v12  ;;  %v556_v41 = vld [vmem:[#allocation9] sm:$0xff]  ;;  %s4099_s22 = smov 16   ;;  %s4100_s14 = smov 120   ;;  %v554_v55 = vld [vmem:[#allocation6] sm:$0xff]  ;;  %vm1711_vm5 = vcmask 523264   ;;  %vm2949_vm6 = vcmask 261127  }
  0xb2   : > { %s3171_s20 = sshll.u32 %s538_s25, 3  ;;  %3363 = vmatprep.mubr.msk.bf16.mxu0 %vm4096_vm1, %v4095_v12  ;;  %3387 = vmatprep.mubr.msk.bf16.mxu1 %vm4096_vm1, %v4095_v12  ;;  %s4101_s29 = smov 8  }
  0xb3   : > { %s540_s24 = scalar_lea.vmem %s4962_s0, %s3171_s20  ;;  %s4102_s23 = smov 96  }
  0xb4   : > { %v542_v0 = vld [vmem:[%s540_s24] sm:$0xff]  ;;  %3362 = vmatpush3.bf16.msra.mxu0 %v3766_v13  ;;  %3386 = vmatpush3.bf16.msra.mxu1 %v3767_v14  ;;  %s4103_s16 = smov 64   ;;  %s3261_s20 = sld [smem:[#allocation12 + $0x1]] }
  0xb5   : > { %v543_v1 = vmul.f32 %v542_v0, %v542_v0  ;;  %3367 = vmatprep.subr.bf16.mxu0 %v4095_v12  ;;  %3397 = vmatprep.subr.bf16.mxu1 %v4095_v12  ;;  %s5015_s26 = sld [smem:[#allocation24_spill]] }
  0xb7   : > { %v545_v2 = vsel %vm544_vm0, %v543_v1, 0.0 }
  0xb8   : > { %546 = vadd.xlane.f32.xlu0 %v545_v2 }
  0xbb   : > { %p5017_p9 = scmp.ne.s32.totalorder %s5015_s26, 0 }
 0x145   : > { %v547_v3 = vpop.xlane.xlu0 %546 }
 0x146   : > { %v549_v4 = vmul.f32 0.03125, %v547_v3 }
 0x148   : > { %v550_v5 = vadd.f32 1.1920929e-07, %v549_v4 }
 0x14a   : > { %3794 = vrsqrt.f32 %v550_v5 }
 0x154   : > { %v3795_v6 = vpop.eup %3794 }
 0x155   : > { %v4382_v7 = vmul.f32 %v3795_v6, %v542_v0 }
 0x157   : > { %v562_v8 = vmul.f32 %v4382_v7, %v4382_v7 }
 0x159   : > { %v563_v9 = vsel %vm544_vm0, %v562_v8, 0.0 }
 0x15a   : > { %564 = vadd.xlane.f32.xlu0 %v563_v9 }
 0x1e7   : > { %v565_v15 = vpop.xlane.xlu0 %564 }
 0x1e8   : > { %v566_v16 = vmul.f32 0.03125, %v565_v15 }
 0x1ea   : > { %v567_v17 = vadd.f32 1.1920929e-07, %v566_v16 }
 0x1ec   : > { %3796 = vrsqrt.f32 %v567_v17 }
 0x1f6   : > { %v3797_v18 = vpop.eup %3796 }
 0x1f7   : > { %v569_v19 = vmul.f32 %v3797_v18, %v4382_v7 }
 0x1f9   : > { %v4398_v21 = vpack.c.bf16 %v569_v19, %v569_v19 }
 0x1fb   : > { %3364 = vmatmul.mubr.msk.bf16.vlgmr.msra.gmra.mrb[0].mxu0 %vm544_vm0, %v4398_v21  ;;  %3388 = vmatmul.mubr.msk.bf16.vlgmr.msra.gmra.mrb[0].mxu1 %vm544_vm0, %v4398_v21 }
 0x1fc   : > { %3368 = vmatpush3.bf16.msra.mxu0 %v3768_v20  ;;  %3371 = vmatprep.mubr.msk.bf16.mxu0 %vm4096_vm1, %v4095_v12 }
 0x1fd   : > { %3369 = vmatprep.subr.bf16.mxu0 %v4095_v12  ;;  %3399 = vmatprep.mubr.msk.bf16.mxu1 %vm4096_vm1, %v4095_v12 }
 0x200   : > { %3370 = vmatpush3.bf16.msra.mxu0 %v3769_v22 }
 0x201   : > { %3375 = vmatprep.subr.bf16.mxu0 %v4095_v12 }
 0x203   : > { %3372 = vmatmul.mubr.msk.bf16.vlgmr.msra.gmra.mrb[4].mxu0 %vm544_vm0, %v4398_v21 }
 0x204   : > { %3376 = vmatpush3.bf16.msra.mxu0 %v3770_v23  ;;  %3379 = vmatprep.mubr.msk.bf16.mxu0 %vm4096_vm1, %v4095_v12 }
 0x205   : > { %3377 = vmatprep.subr.bf16.mxu0 %v4095_v12 }
 0x208   : > { %3378 = vmatpush3.bf16.msra.mxu0 %v3771_v24 }
 0x209   : > { %3391 = vmatprep.subr.bf16.mxu0 %v4095_v12 }
 0x20b   : > { %3380 = vmatmul.mubr.msk.bf16.vlgmr.msra.gmra.mrb[8].mxu0 %vm544_vm0, %v4398_v21 }
 0x20c   : > { %3393 = vmatprep.mubr.msk.bf16.mxu0 %vm4096_vm1, %v4095_v12 }
 0x2ce   : > { %v4420_v25 = vpop.f32.mrb[0].mxu0  ;;  %v4422_v26 = vpop.f32.mrb[0].mxu1 }
 0x2cf   : > { %v3365_v27 = vpop.f32.mrb[1].mxu0  ;;  %v3389_v28 = vpop.f32.mrb[1].mxu1  ;;  %v798_v29 = vmul.f32 %v4420_v25, %v4420_v25  ;;  %v801_v39 = vmul.f32 %v4422_v26, %v4422_v26 }
 0x2d0   : > { %v639_v30 = vpop.f32.mrb[2].mxu0  ;;  %v795_v31 = vpop.f32.mrb[2].mxu1 }
 0x2d1   : > { %v3390_v32 = vpop.f32.mrb[3].mxu1  ;;  %825 = vrot.lane.b32.xlu1 %v798_v29, %s4097_s18  ;;  %v3366_v33 = vpop.f32.mrb[3].mxu0  ;;  %v803_v56 = vsel %vm802_vm2, %v798_v29, 0.0  ;;  %v812_v60 = vsel %vm802_vm2, %v801_v39, 0.0 }
 0x2d6   : > { %v4427_v34 = vpop.f32.mrb[4].mxu0 }
 0x2d7   : > { %v3373_v35 = vpop.f32.mrb[5].mxu0  ;;  %v799_v36 = vmul.f32 %v4427_v34, %v4427_v34 }
 0x2d8   : > { %v691_v37 = vpop.f32.mrb[6].mxu0 }
 0x2d9   : > { %827 = vrot.lane.b32.xlu1 %v799_v36, %s4097_s18  ;;  %v3374_v38 = vpop.f32.mrb[7].mxu0  ;;  %v806_v62 = vsel %vm802_vm2, %v799_v36, 0.0 }
 0x2dd   : > { %831 = vrot.lane.b32.xlu1 %v801_v39, %s4097_s18 }
 0x2de   : > { %v4435_v40 = vpop.f32.mrb[8].mxu0 }
 0x2df   : > { %v3381_v42 = vpop.f32.mrb[9].mxu0  ;;  %v800_v43 = vmul.f32 %v4435_v40, %v4435_v40 }
 0x2e0   : > { %v743_v44 = vpop.f32.mrb[10].mxu0 }
 0x2e1   : > { %900 = vrot.lane.b32.xlu1 %v556_v41, %s4098_s27  ;;  %829 = vrot.lane.b32.xlu0 %v800_v43, %s4097_s18  ;;  %v3382_v45 = vpop.f32.mrb[11].mxu0  ;;  %v809_v57 = vsel %vm802_vm2, %v800_v43, 0.0 }
 0x343   : > { %v826_v46 = vpop.permute.xlu1 %825 }
 0x344   : > { %v837_v47 = vsel %vm802_vm2, %v826_v46, 0.0 }
 0x345   : > { %838 = vadd.xlane.f32.xlu1 %v837_v47 }
 0x34b   : > { %v828_v48 = vpop.permute.xlu1 %827 }
 0x34c   : > { %v840_v49 = vsel %vm802_vm2, %v828_v48, 0.0 }
 0x34d   : > { %841 = vadd.xlane.f32.xlu0 %v840_v49  ;;  %v4487_v49 = vld [vmem:[#allocation2] sm:$0xff] }
 0x34f   : > { %v832_v50 = vpop.permute.xlu1 %831 }
 0x350   : > { %v846_v51 = vsel %vm802_vm2, %v832_v50, 0.0  ;;  %v856_v50 = vmul.f32 %v4427_v34, %v4487_v49 }
 0x351   : > { %847 = vadd.xlane.f32.xlu1 %v846_v51 }
 0x353   : > { %v4443_v52 = vpop.permute.xlu1 %900  ;;  %v830_v58 = vpop.permute.xlu0 %829 }
 0x354   : > { %v904_v54 = vmul.f32 %v4443_v52, %v4427_v34  ;;  %v843_v59 = vsel %vm802_vm2, %v830_v58, 0.0  ;;  %v906_v61 = vmul.f32 %v4443_v52, %v4422_v26  ;;  %v903_v63 = vmul.f32 %v4443_v52, %v4420_v25 }
 0x355   : > { %v905_v28 = vmul.f32 %v4443_v52, %v4435_v40 }
 0x362   : > { %892 = vrot.lane.b32.xlu1 %v555_v53, %s4099_s22  ;;  %s1755_s22 = sld [smem:[#allocation12]] }
 0x363   : > { %913 = vrot.lane.b32.xlu0 %v904_v54, %s4100_s14 }
 0x366   : > { %860 = vrot.lane.b32.xlu1 %v554_v55, %s4101_s29 }
 0x382   : > { %804 = vadd.xlane.f32.xlu0 %v803_v56 }
 0x386   : > { %810 = vadd.xlane.f32.xlu0 %v809_v57 }
 0x38a   : > { %844 = vadd.xlane.f32.xlu1 %v843_v59  ;;  %813 = vadd.xlane.f32.xlu0 %v812_v60 }
 0x39b   : > { %917 = vrot.lane.b32.xlu1 %v906_v61, %s4100_s14 }
 0x3bf   : > { %807 = vadd.xlane.f32.xlu1 %v806_v62  ;;  %v858_v62 = vmul.f32 %v4422_v26, %v4487_v49 }
 0x3d0   : > { %911 = vrot.lane.b32.xlu1 %v903_v63, %s4100_s14 }
 0x3d2   : > { %v839_v0 = vpop.xlane.xlu1 %838 }
 0x3da   : > { %v842_v5 = vpop.xlane.xlu0 %841 }
 0x3db   : > { %v849_v6 = vadd.f32 %v842_v5, %v839_v0 }
 0x3de   : > { %v848_v1 = vpop.xlane.xlu1 %847  ;;  %v914_v17 = vpop.permute.xlu0 %913 }
 0x3e2   : > { %v4459_v2 = vpop.permute.xlu1 %892 }
 0x3e3   : > { %v896_v14 = vmul.f32 %v4459_v2, %v4427_v34  ;;  %v898_v16 = vmul.f32 %v4459_v2, %v4422_v26  ;;  %v895_v33 = vmul.f32 %v4459_v2, %v4420_v25  ;;  %v897_v58 = vmul.f32 %v4459_v2, %v4435_v40 }
 0x3e5   : > { %v924_v19 = vadd.f32 %v914_v17, %v896_v14 }
 0x3e6   : > { %v4461_v3 = vpop.permute.xlu1 %860 }
 0x3e7   : > { %v864_v4 = vmul.f32 %v4461_v3, %v4427_v34  ;;  %v866_v29 = vmul.f32 %v4461_v3, %v4422_v26  ;;  %v863_v30 = vmul.f32 %v4461_v3, %v4420_v25  ;;  %v865_v31 = vmul.f32 %v4461_v3, %v4435_v40 }
 0x3e9   : > { %873 = vrot.lane.b32.xlu1 %v864_v4, %s4100_s14 }
 0x40f   : > { %v805_v39 = vpop.xlane.xlu0 %804 }
 0x413   : > { %v811_v42 = vpop.xlane.xlu0 %810 }
 0x417   : > { %v845_v8 = vpop.xlane.xlu1 %844  ;;  %v814_v44 = vpop.xlane.xlu0 %813 }
 0x418   : > { %v850_v9 = vadd.f32 %v849_v6, %v845_v8 }
 0x41a   : > { %v851_v10 = vadd.f32 %v850_v9, %v848_v1 }
 0x41b   : > { %v918_v15 = vpop.permute.xlu1 %917 }
 0x41c   : > { %v852_v11 = vmul.f32 0.03125, %v851_v10  ;;  %v926_v18 = vadd.f32 %v918_v15, %v898_v16  ;;  %v855_v10 = vmul.f32 %v4420_v25, %v4487_v49 }
 0x41e   : > { %v853_v13 = vadd.f32 1.1920929e-07, %v852_v11 }
 0x420   : > { %3798 = vrsqrt.f32 %v853_v13 }
 0x42a   : > { %v3799_v20 = vpop.eup %3798 }
 0x42b   : > { %v930_v22 = vmul.f32 %v3799_v20, %v926_v18  ;;  %v928_v23 = vmul.f32 %v3799_v20, %v924_v19  ;;  %v857_v18 = vmul.f32 %v4435_v40, %v4487_v49 }
 0x42d   : > { %v938_v24 = vpack.c.bf16 %v930_v22, %v930_v22  ;;  %v936_v27 = vpack.c.bf16 %v928_v23, %v928_v23 }
 0x42f   : > { %1087 = vrot.lane.b32.xlu1 %v938_v24, %s4097_s18  ;;  %989 = vrot.lane.b32.xlu0 %v936_v27, %s4097_s18  ;;  %v557_v27 = vlaneseq }
 0x433   : > { %915 = vrot.lane.b32.xlu1 %v905_v28, %s4100_s14  ;;  %877 = vrot.lane.b32.xlu0 %v866_v29, %s4100_s14  ;;  %v558_v28 = vshrl.u32 %v557_v27, 7  ;;  %v560_v29 = vand.u32 127, %v557_v27 }
 0x435   : > { %vm4520_vm3 = vcmp.le.s32.totalorder %v560_v29, %v558_v28 }
 0x437   : > { %871 = vrot.lane.b32.xlu1 %v863_v30, %s4100_s14 }
 0x43b   : > { %875 = vrot.lane.b32.xlu1 %v865_v31, %s4100_s14 }
 0x44c   : > { %v808_v32 = vpop.xlane.xlu1 %807 }
 0x44d   : > { %v815_v41 = vadd.f32 %v808_v32, %v805_v39 }
 0x44f   : > { %v816_v43 = vadd.f32 %v815_v41, %v811_v42 }
 0x450   : > { %v912_v35 = vpop.permute.xlu1 %911 }
 0x451   : > { %v923_v36 = vadd.f32 %v912_v35, %v895_v33  ;;  %v817_v45 = vadd.f32 %v816_v43, %v814_v44 }
 0x453   : > { %v927_v37 = vmul.f32 %v3799_v20, %v923_v36  ;;  %v818_v46 = vmul.f32 0.03125, %v817_v45  ;;  %v1182_v45 = vpack.c.bf16 %v4427_v34, %v4427_v34  ;;  %v1181_v34 = vpack.c.bf16 %v4420_v25, %v4420_v25 }
 0x455   : > { %v935_v38 = vpack.c.bf16 %v927_v37, %v927_v37  ;;  %v819_v47 = vadd.f32 1.1920929e-07, %v818_v46  ;;  %v1184_v46 = vpack.c.bf16 %v4422_v26, %v4422_v26 }
 0x457   : > { %940 = vrot.lane.b32.xlu0 %v935_v38, %s4097_s18  ;;  %3800 = vrsqrt.f32 %v819_v47 }
 0x45b   : > { %v874_v48 = vpop.permute.xlu1 %873 }
 0x45c   : > { %v884_v55 = vadd.f32 %v874_v48, %v856_v50 }
 0x461   : > { %v3801_v51 = vpop.eup %3800 }
 0x462   : > { %v888_v57 = vmul.f32 %v3801_v51, %v884_v55 }
 0x464   : > { %v932_v63 = vpack.c.bf16 %v888_v57, %v888_v57 }
 0x4a1   : > { %v1088_v53 = vpop.permute.xlu1 %1087  ;;  %v990_v54 = vpop.permute.xlu0 %989 }
 0x4a2   : > { %v995_v56 = vsel %vm802_vm2, %v990_v54, 0  ;;  %v1093_v4 = vsel %vm802_vm2, %v1088_v53, 0 }
 0x4a3   : > { %3398 = vmatpush3.bf16.xpose.msra.mxu1 %v995_v56 }
 0x4a4   : > { %3409 = vmatprep.subr.bf16.mxu1 %v4095_v12 }
 0x4a5   : > { %v916_v59 = vpop.permute.xlu1 %915  ;;  %v878_v60 = vpop.permute.xlu0 %877 }
 0x4a6   : > { %v925_v61 = vadd.f32 %v916_v59, %v897_v58  ;;  %v886_v1 = vadd.f32 %v878_v60, %v858_v62  ;;  %v1183_v60 = vpack.c.bf16 %v4435_v40, %v4435_v40 }
 0x4a8   : > { %v929_v0 = vmul.f32 %v3799_v20, %v925_v61  ;;  %v890_v6 = vmul.f32 %v3801_v51, %v886_v1 }
 0x4a9   : > { %v872_v9 = vpop.permute.xlu1 %871 }
 0x4aa   : > { %v937_v5 = vpack.c.bf16 %v929_v0, %v929_v0  ;;  %3400 = vmatmul.mubr.msk.bf16.vlgmr.msra.gmra.mrb[4].mxu1 %vm802_vm2, %v932_v63  ;;  %v934_v8 = vpack.c.bf16 %v890_v6, %v890_v6  ;;  %v883_v11 = vadd.f32 %v872_v9, %v855_v10 }
 0x4ab   : > { %3410 = vmatpush3.bf16.xpose.msra.mxu1 %v1093_v4  ;;  %3411 = vmatprep.mubr.msk.bf16.mxu1 %vm4096_vm1, %v4095_v12 }
 0x4ac   : > { %1038 = vrot.lane.b32.xlu0 %v937_v5, %s4097_s18  ;;  %3421 = vmatprep.subr.bf16.mxu1 %v4095_v12  ;;  %v887_v15 = vmul.f32 %v3801_v51, %v883_v11  ;;  %v3772_v11 = vld [vmem:[%s4970_s8] sm:$0xff]  }
 0x4ad   : > { %v876_v17 = vpop.permute.xlu1 %875 }
 0x4ae   : > { %v931_v16 = vpack.c.bf16 %v887_v15, %v887_v15  ;;  %v885_v19 = vadd.f32 %v876_v17, %v857_v18 }
 0x4b0   : > { %v889_v23 = vmul.f32 %v3801_v51, %v885_v19 }
 0x4b2   : > { %3412 = vmatmul.mubr.msk.bf16.vlgmr.msra.gmra.mrb[8].mxu1 %vm802_vm2, %v934_v8  ;;  %v933_v24 = vpack.c.bf16 %v889_v23, %v889_v23 }
 0x4b3   : > { %3423 = vmatprep.mubr.msk.bf16.mxu1 %vm4096_vm1, %v4095_v12 }
 0x4c9   : > { %v941_v13 = vpop.permute.xlu0 %940 }
 0x4ca   : > { %v946_v14 = vsel %vm802_vm2, %v941_v13, 0 }
 0x4cb   : > { %3392 = vmatpush3.bf16.xpose.msra.mxu0 %v946_v14  ;;  %v3773_v14 = vld [vmem:[%s4970_s8 + $0x8] sm:$0xff]  }
 0x4cc   : > { %3403 = vmatprep.subr.bf16.mxu0 %v4095_v12 }
 0x4d2   : > { %3394 = vmatmul.mubr.msk.bf16.vlgmr.msra.gmra.mrb[12].mxu0 %vm802_vm2, %v931_v16 }
 0x4d3   : > { %3405 = vmatprep.mubr.msk.bf16.mxu0 %vm4096_vm1, %v4095_v12 }
 0x51e   : > { %v1039_v20 = vpop.permute.xlu0 %1038 }
 0x51f   : > { %v1044_v22 = vsel %vm802_vm2, %v1039_v20, 0 }
 0x520   : > { %3404 = vmatpush3.bf16.xpose.msra.mxu0 %v1044_v22 }
 0x521   : > { %3415 = vmatprep.subr.bf16.mxu0 %v4095_v12 }
 0x527   : > { %3406 = vmatmul.mubr.msk.bf16.vlgmr.msra.gmra.mrb[16].mxu0 %vm802_vm2, %v933_v24 }
 0x528   : > { %3417 = vmatprep.mubr.msk.bf16.mxu0 %vm4096_vm1, %v4095_v12 }
 0x57d   : > { %v1031_v31 = vpop.f32.mrb[4].mxu1 }
 0x57e   : > { %v1138_v32 = vsel %vm4520_vm3, %v1031_v31, -1e+30  ;;  %v3401_v33 = vpop.f32.mrb[5].mxu1 }
 0x57f   : > { %v1034_v35 = vpop.f32.mrb[6].mxu1  ;;  %v1144_v36 = vsel %vm802_vm2, %v1138_v32, -inf }
 0x580   : > { %1145 = vmax.xlane.f32.xlu0 %v1144_v36  ;;  %v3402_v37 = vpop.f32.mrb[7].mxu1 }
 0x581   : > { %v1394_v37 = vld [vmem:[%s4968_s6] sm:$0xf] }
 0x585   : > { %v1129_v38 = vpop.f32.mrb[8].mxu1 }
 0x586   : > { %v1140_v39 = vsel %vm4520_vm3, %v1129_v38, -1e+30  ;;  %v3413_v41 = vpop.f32.mrb[9].mxu1  ;;  %v1402_v38 = vsel %vm1191_vm4, %v1394_v37, 0 }
 0x587   : > { %v1132_v42 = vpop.f32.mrb[10].mxu1  ;;  %v1150_v43 = vsel %vm802_vm2, %v1140_v39, -inf }
 0x588   : > { %1151 = vmax.xlane.f32.xlu1 %v1150_v43  ;;  %v3414_v44 = vpop.f32.mrb[11].mxu1 }
 0x596   : > { %1236 = vrot.lane.b32.xlu0 %v1182_v45, %s4102_s23 }
 0x599   : > { %1334 = vrot.lane.b32.xlu1 %v1184_v46, %s4102_s23 }
 0x5a5   : > { %v982_v47 = vpop.f32.mrb[12].mxu0 }
 0x5a6   : > { %v3395_v48 = vpop.f32.mrb[13].mxu0  ;;  %v1137_v53 = vsel %vm4520_vm3, %v982_v47, -1e+30 }
 0x5a7   : > { %v985_v50 = vpop.f32.mrb[14].mxu0  ;;  %v1141_v54 = vsel %vm802_vm2, %v1137_v53, -inf  ;;  %v3197_v48 = vld [vmem:[%s4971_s9] ss:$0 sm:$0xff] }
 0x5a8   : > { %v3396_v51 = vpop.f32.mrb[15].mxu0 }
 0x5b5   : > { %1142 = vmax.xlane.f32.xlu0 %v1141_v54 }
 0x5cb   : > { %1186 = vrot.lane.b32.xlu0 %v1181_v34, %s4102_s23 }
 0x5fa   : > { %v1080_v55 = vpop.f32.mrb[16].mxu0 }
 0x5fb   : > { %v1139_v26 = vsel %vm4520_vm3, %v1080_v55, -1e+30  ;;  %v3407_v56 = vpop.f32.mrb[17].mxu0 }
 0x5fc   : > { %v1083_v57 = vpop.f32.mrb[18].mxu0  ;;  %v1147_v58 = vsel %vm802_vm2, %v1139_v26, -inf }
 0x5fd   : > { %1148 = vmax.xlane.f32.xlu1 %v1147_v58  ;;  %v3408_v59 = vpop.f32.mrb[19].mxu0 }
 0x60d   : > { %v1146_v61 = vpop.xlane.xlu0 %1145 }
 0x60e   : > { %v1154_v62 = vsub.f32 %v1138_v32, %v1146_v61  ;;  %1285 = vrot.lane.b32.xlu1 %v1183_v60, %s4102_s23 }
 0x610   : > { %v1159_v25 = vmul.f32 1.442695, %v1154_v62 }
 0x611   : > { %v1237_v63 = vpop.permute.xlu0 %1236 }
 0x612   : > { %3802 = vpow2.f32 %v1159_v25  ;;  %v1242_v0 = vsel %vm1191_vm4, %v1237_v63, 0  ;;  %v1395_v25 = vld [vmem:[%s4968_s6 + $0x4] sm:$0xf] }
 0x613   : > { %3422 = vmatpush3.bf16.msra.mxu1 %v1242_v0 }
 0x614   : > { %3433 = vmatprep.subr.bf16.mxu1 %v4095_v12 }
 0x615   : > { %v1152_v1 = vpop.xlane.xlu1 %1151 }
 0x616   : > { %v1156_v4 = vsub.f32 %v1140_v39, %v1152_v1 }
 0x618   : > { %v1163_v5 = vmul.f32 1.442695, %v1156_v4 }
 0x619   : > { %v1335_v8 = vpop.permute.xlu1 %1334 }
 0x61a   : > { %3804 = vpow2.f32 %v1163_v5  ;;  %v1340_v9 = vsel %vm1191_vm4, %v1335_v8, 0 }
 0x61c   : > { %v3803_v6 = vpop.eup %3802 }
 0x61d   : > { %v1178_v40 = vpack.c.bf16 %v3803_v6, %v3803_v6  ;;  %v1168_v15 = vsel %vm802_vm2, %v3803_v6, 0.0  ;;  %v1448_v6 = vsel %vm1191_vm4, %v1395_v25, 0  ;;  %v3782_v25 = vld [vmem:[#allocation11 + $0x60] sm:$0xff]  }
 0x61f   : > { %3424 = vmatmul.mubr.msk.bf16.vlgmr.msra.gmra.mrb[12].mxu1 %vm802_vm2, %v1178_v40 }
 0x620   : > { %3434 = vmatpush3.bf16.msra.mxu1 %v1340_v9  ;;  %3435 = vmatprep.mubr.msk.bf16.mxu1 %vm4096_vm1, %v4095_v12  ;;  %v1396_v9 = vld [vmem:[%s4968_s6 + $0x8] sm:$0xf] }
 0x621   : > { %3463 = vmatprep.subr.bf16.mxu1 %v4095_v12 }
 0x624   : > { %v3805_v10 = vpop.eup %3804 }
 0x625   : > { %v1180_v13 = vpack.c.bf16 %v3805_v10, %v3805_v10  ;;  %v1174_v36 = vsel %vm802_vm2, %v3805_v10, 0.0 }
 0x627   : > { %3436 = vmatmul.mubr.msk.bf16.vlgmr.msra.gmra.mrb[16].mxu1 %vm802_vm2, %v1180_v13 }
 0x628   : > { %3464 = vmatpush3.bf16.msra.mxu1 %v3772_v11  ;;  %3467 = vmatprep.mubr.msk.bf16.mxu1 %vm4096_vm1, %v4095_v12  ;;  %v1494_v11 = vsel %vm1191_vm4, %v1396_v9, 0 }
 0x629   : > { %3465 = vmatprep.subr.bf16.mxu1 %v4095_v12 }
 0x62c   : > { %3466 = vmatpush3.bf16.msra.mxu1 %v3773_v14 }
 0x62d   : > { %3483 = vmatprep.subr.bf16.mxu1 %v4095_v12 }
 0x62f   : > { %3468 = vmatmul.mubr.msk.bf16.vlgmr.msra.gmra.mrb[20].mxu1 %vm544_vm0, %v4398_v21 }
 0x630   : > { %3487 = vmatprep.mubr.msk.bf16.mxu1 %vm4096_vm1, %v4095_v12 }
 0x632   : > { %1169 = vadd.xlane.f32.xlu1 %v1168_v15 }
 0x642   : > { %v1143_v16 = vpop.xlane.xlu0 %1142 }
 0x643   : > { %v1153_v17 = vsub.f32 %v1137_v53, %v1143_v16 }
 0x645   : > { %v1157_v18 = vmul.f32 1.442695, %v1153_v17  ;;  %v1397_v17 = vld [vmem:[%s4968_s6 + $0xc] sm:$0xf] }
 0x646   : > { %v1187_v19 = vpop.permute.xlu0 %1186 }
 0x647   : > { %3806 = vpow2.f32 %v1157_v18  ;;  %v1193_v20 = vsel %vm1191_vm4, %v1187_v19, 0 }
 0x648   : > { %3416 = vmatpush3.bf16.msra.mxu0 %v1193_v20 }
 0x649   : > { %3427 = vmatprep.subr.bf16.mxu0 %v4095_v12 }
 0x651   : > { %v3807_v22 = vpop.eup %3806 }
 0x652   : > { %v1165_v23 = vsel %vm802_vm2, %v3807_v22, 0.0  ;;  %v1177_v21 = vpack.c.bf16 %v3807_v22, %v3807_v22 }
 0x653   : > { %1166 = vadd.xlane.f32.xlu0 %v1165_v23 }
 0x654   : > { %3418 = vmatmul.mubr.msk.bf16.vlgmr.msra.gmra.mrb[20].mxu0 %vm802_vm2, %v1177_v21  ;;  %v1540_v21 = vsel %vm1191_vm4, %v1397_v17, 0 }
 0x655   : > { %3429 = vmatprep.mubr.msk.bf16.mxu0 %vm4096_vm1, %v4095_v12 }
 0x68a   : > { %v1149_v24 = vpop.xlane.xlu1 %1148 }
 0x68b   : > { %v1155_v27 = vsub.f32 %v1139_v26, %v1149_v24 }
 0x68d   : > { %v1161_v28 = vmul.f32 1.442695, %v1155_v27 }
 0x68e   : > { %v1286_v29 = vpop.permute.xlu1 %1285 }
 0x68f   : > { %3808 = vpow2.f32 %v1161_v28  ;;  %v1291_v31 = vsel %vm1191_vm4, %v1286_v29, 0  ;;  %v3774_v28 = vld [vmem:[%s4972_s10] sm:$0xff]  }
 0x690   : > { %3428 = vmatpush3.bf16.msra.mxu0 %v1291_v31  ;;  %v3775_v31 = vld [vmem:[%s4972_s10 + $0x8] sm:$0xff]  }
 0x691   : > { %3439 = vmatprep.subr.bf16.mxu0 %v4095_v12 }
 0x699   : > { %v3809_v32 = vpop.eup %3808 }
 0x69a   : > { %v1171_v33 = vsel %vm802_vm2, %v3809_v32, 0.0  ;;  %v1179_v35 = vpack.c.bf16 %v3809_v32, %v3809_v32  ;;  %v3776_v32 = vld [vmem:[%s4972_s10 + $0x10] sm:$0xff]  }
 0x69b   : > { %1172 = vadd.xlane.f32.xlu0 %v1171_v33  ;;  %v3777_v33 = vld [vmem:[%s4972_s10 + $0x18] sm:$0xff]  }
 0x69c   : > { %3430 = vmatmul.mubr.msk.bf16.vlgmr.msra.gmra.mrb[24].mxu0 %vm802_vm2, %v1179_v35 }
 0x69d   : > { %3441 = vmatprep.mubr.msk.bf16.mxu0 %vm4096_vm1, %v4095_v12  ;;  %3440 = vmatpush3.bf16.msra.mxu0 %v1402_v38 }
 0x69e   : > { %3445 = vmatprep.subr.bf16.mxu0 %v4095_v12 }
 0x69f   : > { %1175 = vadd.xlane.f32.xlu0 %v1174_v36 }
 0x6bf   : > { %v1170_v60 = vpop.xlane.xlu1 %1169 }
 0x6e0   : > { %v1167_v58 = vpop.xlane.xlu0 %1166 }
 0x6f2   : > { %v1278_v39 = vpop.f32.mrb[12].mxu1 }
 0x6f3   : > { %v3425_v41 = vpop.f32.mrb[13].mxu1 }
 0x6f4   : > { %v1281_v42 = vpop.f32.mrb[14].mxu1  ;;  %v3196_v41 = vld [vmem:[%s4969_s7] ss:$0 sm:$0xff] }
 0x6f5   : > { %v3426_v43 = vpop.f32.mrb[15].mxu1  ;;  %v3201_v42 = vld [vmem:[%s4973_s11] ss:$0 sm:$0xff] }
 0x6f6   : > { %v3615_v43 = vadd.f32 %v3201_v42, %v3196_v41 }
 0x6fa   : > { %v4589_v44 = vpop.f32.mrb[16].mxu1 }
 0x6fb   : > { %v3437_v45 = vpop.f32.mrb[17].mxu1 }
 0x6fc   : > { %v1379_v46 = vpop.f32.mrb[18].mxu1 }
 0x6fd   : > { %v3438_v47 = vpop.f32.mrb[19].mxu1 }
 0x702   : > { %v1650_v50 = vpop.f32.mrb[20].mxu1 }
 0x703   : > { %v4594_v51 = vadd.f32 %v3197_v48, %v1650_v50  ;;  %v3469_v53 = vpop.f32.mrb[21].mxu1 }
 0x704   : > { %v1653_v54 = vpop.f32.mrb[22].mxu1 }
 0x705   : > { %v1661_v34 = vsub.f32 0.0, %v4594_v51  ;;  %v3470_v55 = vpop.f32.mrb[23].mxu1  ;;  %1657 = vrot.lane.b32.xlu1 %v4594_v51, %s4103_s16 }
 0x706   : > { %v3778_v55 = vld [vmem:[#allocation11 + $0x40] sm:$0xff]  }
 0x707   : > { %v1662_v26 = vmul.f32 1.442695, %v1661_v34  ;;  %3484 = vmatpush3.bf16.msra.mxu1 %v3778_v55 }
 0x708   : > { %3485 = vmatprep.subr.bf16.mxu1 %v4095_v12 }
 0x709   : > { %3810 = vpow2.f32 %v1662_v26  ;;  %v3779_v26 = vld [vmem:[#allocation11 + $0x48] sm:$0xff]  }
 0x70b   : > { %3486 = vmatpush3.bf16.msra.mxu1 %v3779_v26 }
 0x70c   : > { %3491 = vmatprep.subr.bf16.mxu1 %v4095_v12 }
 0x713   : > { %v3811_v56 = vpop.eup %3810 }
 0x714   : > { %v1664_v57 = vadd.f32 1.0, %v3811_v56 }
 0x716   : > { %3812 = vrcp.f32 %v1664_v57 }
 0x717   : > { %3814 = vrcp.f32 %v1167_v58 }
 0x718   : > { %3816 = vrcp.f32 %v1170_v60  ;;  %v3780_v60 = vld [vmem:[#allocation11 + $0x50] sm:$0xff]  }
 0x720   : > { %v3813_v59 = vpop.eup %3812 }
 0x721   : > { %1667 = vrot.lane.b32.xlu0 %v3813_v59, %s4103_s16  ;;  %v3815_v61 = vpop.eup %3814 }
 0x722   : > { %v3817_v8 = vpop.eup %3816 }
 0x723   : > { %v1387_v40 = vmul.f32 %v3817_v8, %v1278_v39 }
 0x725   : > { %v1391_v10 = vpack.c.bf16 %v1387_v40, %v1387_v40 }
 0x727   : > { %v1229_v62 = vpop.f32.mrb[20].mxu0 }
 0x728   : > { %v1386_v63 = vmul.f32 %v3815_v61, %v1229_v62  ;;  %v3419_v0 = vpop.f32.mrb[21].mxu0  ;;  %v1173_v13 = vpop.xlane.xlu0 %1172  ;;  %v3781_v62 = vld [vmem:[#allocation11 + $0x58] sm:$0xff]  }
 0x729   : > { %v1232_v1 = vpop.f32.mrb[22].mxu0  ;;  %3818 = vrcp.f32 %v1173_v13  ;;  %v3784_v0 = vld [vmem:[#allocation11 + $0x70] sm:$0xff]  }
 0x72a   : > { %v1390_v4 = vpack.c.bf16 %v1386_v63, %v1386_v63  ;;  %v3420_v5 = vpop.f32.mrb[23].mxu0  ;;  %v3783_v63 = vld [vmem:[#allocation11 + $0x68] sm:$0xff]   ;;  %v3785_v1 = vld [vmem:[#allocation11 + $0x78] sm:$0xff]  }
 0x72c   : > { %3442 = vmatmul.mubr.msk.bf16.vlgmr.msra.gmra.mrb[28].mxu0 %vm802_vm2, %v1390_v4  ;;  %v1176_v14 = vpop.xlane.xlu0 %1175 }
 0x72d   : > { %3446 = vmatpush3.bf16.msra.mxu0 %v1448_v6  ;;  %3447 = vmatprep.mubr.msk.bf16.mxu0 %vm4096_vm1, %v4095_v12  ;;  %3820 = vrcp.f32 %v1176_v14 }
 0x72e   : > { %3451 = vmatprep.subr.bf16.mxu0 %v4095_v12 }
 0x733   : > { %v3819_v15 = vpop.eup %3818 }
 0x737   : > { %v3821_v24 = vpop.eup %3820 }
 0x738   : > { %3448 = vmatmul.mubr.msk.bf16.vlgmr.msra.gmra.mrb[28].mxu0 %vm802_vm2, %v1391_v10  ;;  %v1389_v27 = vmul.f32 %v3821_v24, %v4589_v44  ;;  %v1756_v44 = vstv %s1755_s22 }
 0x739   : > { %3452 = vmatpush3.bf16.msra.mxu0 %v1494_v11  ;;  %3453 = vmatprep.mubr.msk.bf16.mxu0 %vm4096_vm1, %v4095_v12  ;;  %v1757_v46 = vmul.f32 %v1756_v44, %v4382_v7 }
 0x73a   : > { %3457 = vmatprep.subr.bf16.mxu0 %v4095_v12  ;;  %v1393_v29 = vpack.c.bf16 %v1389_v27, %v1389_v27 }
 0x76f   : > { %v1327_v16 = vpop.f32.mrb[24].mxu0 }
 0x770   : > { %v1388_v18 = vmul.f32 %v3819_v15, %v1327_v16  ;;  %v3431_v19 = vpop.f32.mrb[25].mxu0 }
 0x771   : > { %v1330_v20 = vpop.f32.mrb[26].mxu0 }
 0x772   : > { %v1392_v22 = vpack.c.bf16 %v1388_v18, %v1388_v18  ;;  %v3432_v23 = vpop.f32.mrb[27].mxu0 }
 0x774   : > { %3454 = vmatmul.mubr.msk.bf16.vlgmr.msra.gmra.mrb[28].mxu0 %vm802_vm2, %v1392_v22 }
 0x775   : > { %3458 = vmatpush3.bf16.msra.mxu0 %v1540_v21  ;;  %3459 = vmatprep.mubr.msk.bf16.mxu0 %vm4096_vm1, %v4095_v12 }
 0x776   : > { %3471 = vmatprep.subr.bf16.mxu0 %v4095_v12 }
 0x777   : > { %v1658_v35 = vpop.permute.xlu1 %1657 }
 0x778   : > { %v1660_v36 = vmul.f32 %v1658_v35, %v4594_v51 }
 0x780   : > { %3460 = vmatmul.mubr.msk.bf16.vlgmr.msra.gmra.mrb[28].mxu0 %vm802_vm2, %v1393_v29 }
 0x781   : > { %3472 = vmatpush3.bf16.msra.mxu0 %v3774_v28  ;;  %3479 = vmatprep.mubr.msk.bf16.mxu0 %vm4096_vm1, %v4095_v12 }
 0x782   : > { %3473 = vmatprep.subr.bf16.mxu0 %v4095_v12 }
 0x785   : > { %3474 = vmatpush3.bf16.msra.mxu0 %v3775_v31 }
 0x786   : > { %3475 = vmatprep.subr.bf16.mxu0 %v4095_v12 }
 0x789   : > { %3476 = vmatpush3.bf16.msra.mxu0 %v3776_v32 }
 0x78a   : > { %3477 = vmatprep.subr.bf16.mxu0 %v4095_v12 }
 0x78d   : > { %3478 = vmatpush3.bf16.msra.mxu0 %v3777_v33 }
 0x78e   : > { %3521 = vmatprep.subr.bf16.mxu0 %v4095_v12 }
 0x793   : > { %v1668_v37 = vpop.permute.xlu0 %1667 }
 0x794   : > { %v1670_v38 = vmul.f32 %v1668_v37, %v1660_v36 }
 0x796   : > { %v1671_v39 = vpack.c.bf16 %v1670_v38, %v1670_v38 }
 0x798   : > { %3480 = vmatmul.mubr.msk.bf16.vlgmr.msra.gmra.mrb[28].mxu0 %vm1711_vm5, %v1671_v39 }
 0x799   : > { %3523 = vmatprep.mubr.msk.bf16.mxu0 %vm4096_vm1, %v4095_v12 }
 0x86b   : > { %v1749_v45 = vpop.f32.mrb[28].mxu0 }
 0x86c   : > { %v3616_v47 = vadd.f32 %v3615_v43, %v1749_v45  ;;  %v3481_v48 = vpop.f32.mrb[29].mxu0 }
 0x86d   : > { %v1752_v50 = vpop.f32.mrb[30].mxu0 }
 0x86e   : > { %v4655_v51 = vadd.f32 %v3616_v47, %v1757_v46  ;;  %v3482_v53 = vpop.f32.mrb[31].mxu0 }
 0x870   : > { %v1760_v54 = vmul.f32 %v4655_v51, %v4655_v51 }
 0x872   : > { %v1761_v34 = vsel %vm544_vm0, %v1760_v54, 0.0 }
 0x873   : > { %1762 = vadd.xlane.f32.xlu1 %v1761_v34 }
 0x900   : > { %v1763_v7 = vpop.xlane.xlu1 %1762 }
 0x901   : > { %v1764_v56 = vmul.f32 0.03125, %v1763_v7 }
 0x903   : > { %v1765_v57 = vadd.f32 1.1920929e-07, %v1764_v56 }
 0x905   : > { %3822 = vrsqrt.f32 %v1765_v57 }
 0x90f   : > { %v3823_v58 = vpop.eup %3822 }
 0x910   : > { %v1767_v59 = vmul.f32 %v3823_v58, %v4655_v51 }
 0x912   : > { %v4663_v61 = vpack.c.bf16 %v1767_v59, %v1767_v59 }
 0x914   : > { %3488 = vmatmul.mubr.msk.bf16.vlgmr.msra.gmra.mrb[24].mxu1 %vm544_vm0, %v4663_v61 }
 0x915   : > { %3492 = vmatpush3.bf16.msra.mxu1 %v3780_v60  ;;  %3495 = vmatprep.mubr.msk.bf16.mxu1 %vm4096_vm1, %v4095_v12 }
 0x916   : > { %3493 = vmatprep.subr.bf16.mxu1 %v4095_v12 }
 0x919   : > { %3494 = vmatpush3.bf16.msra.mxu1 %v3781_v62 }
 0x91a   : > { %3499 = vmatprep.subr.bf16.mxu1 %v4095_v12 }
 0x91c   : > { %3496 = vmatmul.mubr.msk.bf16.vlgmr.msra.gmra.mrb[28].mxu1 %vm544_vm0, %v4663_v61 }
 0x91d   : > { %3500 = vmatpush3.bf16.msra.mxu1 %v3782_v25  ;;  %3503 = vmatprep.mubr.msk.bf16.mxu1 %vm4096_vm1, %v4095_v12 }
 0x91e   : > { %3501 = vmatprep.subr.bf16.mxu1 %v4095_v12 }
 0x921   : > { %3502 = vmatpush3.bf16.msra.mxu1 %v3783_v63 }
 0x922   : > { %3507 = vmatprep.subr.bf16.mxu1 %v4095_v12 }
 0x924   : > { %3504 = vmatmul.mubr.msk.bf16.vlgmr.msra.gmra.mrb[32].mxu1 %vm544_vm0, %v4663_v61 }
 0x925   : > { %3508 = vmatpush3.bf16.msra.mxu1 %v3784_v0  ;;  %3511 = vmatprep.mubr.msk.bf16.mxu1 %vm4096_vm1, %v4095_v12 }
 0x926   : > { %3509 = vmatprep.subr.bf16.mxu1 %v4095_v12 }
 0x929   : > { %3510 = vmatpush3.bf16.msra.mxu1 %v3785_v1 }
 0x92a   : > { %3515 = vmatprep.subr.bf16.mxu1 %v4095_v12 }
 0x92c   : > { %3512 = vmatmul.mubr.msk.bf16.vlgmr.msra.gmra.mrb[36].mxu1 %vm544_vm0, %v4663_v61 }
 0x92d   : > { %3517 = vmatprep.mubr.msk.bf16.mxu1 %vm4096_vm1, %v4095_v12 }
 0x9e7   : > { %v4687_v4 = vpop.f32.mrb[24].mxu1 }
 0x9e8   : > { %v3489_v5 = vpop.f32.mrb[25].mxu1  ;;  %v1997_v6 = vmul.f32 %v4687_v4, %v4687_v4  ;;  %v2089_v41 = vmul.f32 %v4687_v4, %v4443_v52 }
 0x9e9   : > { %v1838_v8 = vpop.f32.mrb[26].mxu1 }
 0x9ea   : > { %2023 = vrot.lane.b32.xlu0 %v1997_v6, %s4097_s18  ;;  %v3490_v40 = vpop.f32.mrb[27].mxu1  ;;  %v2001_v42 = vsel %vm802_vm2, %v1997_v6, 0.0  ;;  %v2057_v6 = vmul.f32 %v4687_v4, %v4461_v3 }
 0x9ef   : > { %v4692_v9 = vpop.f32.mrb[28].mxu1 }
 0x9f0   : > { %v3497_v10 = vpop.f32.mrb[29].mxu1  ;;  %v1998_v11 = vmul.f32 %v4692_v9, %v4692_v9  ;;  %v2090_v38 = vmul.f32 %v4692_v9, %v4443_v52  ;;  %v2086_v57 = vmul.f32 %v4692_v9, %v4459_v2  ;;  %v2058_v5 = vmul.f32 %v4692_v9, %v4461_v3 }
 0x9f1   : > { %v1890_v13 = vpop.f32.mrb[30].mxu1 }
 0x9f2   : > { %2025 = vrot.lane.b32.xlu0 %v1998_v11, %s4097_s18  ;;  %v3498_v14 = vpop.f32.mrb[31].mxu1  ;;  %v2004_v39 = vsel %vm802_vm2, %v1998_v11, 0.0 }
 0x9f7   : > { %v4697_v15 = vpop.f32.mrb[32].mxu1 }
 0x9f8   : > { %v3505_v16 = vpop.f32.mrb[33].mxu1  ;;  %v1999_v17 = vmul.f32 %v4697_v15, %v4697_v15  ;;  %v2091_v1 = vmul.f32 %v4697_v15, %v4443_v52  ;;  %v2059_v10 = vmul.f32 %v4697_v15, %v4461_v3 }
 0x9f9   : > { %v1942_v18 = vpop.f32.mrb[34].mxu1 }
 0x9fa   : > { %2027 = vrot.lane.b32.xlu0 %v1999_v17, %s4097_s18  ;;  %v3506_v19 = vpop.f32.mrb[35].mxu1  ;;  %v2007_v43 = vsel %vm802_vm2, %v1999_v17, 0.0 }
 0x9ff   : > { %v4702_v20 = vpop.f32.mrb[36].mxu1 }
 0xa00   : > { %v3513_v22 = vpop.f32.mrb[37].mxu1  ;;  %v2000_v23 = vmul.f32 %v4702_v20, %v4702_v20  ;;  %v2092_v35 = vmul.f32 %v4702_v20, %v4443_v52  ;;  %v2088_v56 = vmul.f32 %v4702_v20, %v4459_v2  ;;  %v2060_v8 = vmul.f32 %v4702_v20, %v4461_v3 }
 0xa01   : > { %v1994_v21 = vpop.f32.mrb[38].mxu1  ;;  %v2085_v52 = vmul.f32 %v4687_v4, %v4459_v2 }
 0xa02   : > { %2029 = vrot.lane.b32.xlu0 %v2000_v23, %s4097_s18  ;;  %v3514_v24 = vpop.f32.mrb[39].mxu1  ;;  %v2010_v44 = vsel %vm802_vm2, %v2000_v23, 0.0 }
 0xa5c   : > { %v2024_v27 = vpop.permute.xlu0 %2023 }
 0xa5d   : > { %v2035_v28 = vsel %vm802_vm2, %v2024_v27, 0.0 }
 0xa5e   : > { %2036 = vadd.xlane.f32.xlu0 %v2035_v28 }
 0xa64   : > { %v2026_v29 = vpop.permute.xlu0 %2025 }
 0xa65   : > { %v2038_v31 = vsel %vm802_vm2, %v2026_v29, 0.0 }
 0xa66   : > { %2039 = vadd.xlane.f32.xlu1 %v2038_v31  ;;  %v2087_v31 = vmul.f32 %v4697_v15, %v4459_v2 }
 0xa6c   : > { %v2028_v32 = vpop.permute.xlu0 %2027 }
 0xa6d   : > { %v2041_v33 = vsel %vm802_vm2, %v2028_v32, 0.0  ;;  %v2054_v32 = vmul.f32 %v4692_v9, %v4487_v49 }
 0xa6e   : > { %2042 = vadd.xlane.f32.xlu1 %v2041_v33 }
 0xa74   : > { %2103 = vrot.lane.b32.xlu0 %v2092_v35, %s4100_s14  ;;  %v2030_v36 = vpop.permute.xlu0 %2029 }
 0xa75   : > { %v2044_v37 = vsel %vm802_vm2, %v2030_v36, 0.0 }
 0xa76   : > { %2045 = vadd.xlane.f32.xlu1 %v2044_v37 }
 0xa87   : > { %2099 = vrot.lane.b32.xlu1 %v2090_v38, %s4100_s14 }
 0xa93   : > { %2005 = vadd.xlane.f32.xlu0 %v2004_v39 }
 0xaa9   : > { %2097 = vrot.lane.b32.xlu0 %v2089_v41, %s4100_s14 }
 0xaab   : > { %2002 = vadd.xlane.f32.xlu1 %v2001_v42  ;;  %v2053_v42 = vmul.f32 %v4687_v4, %v4487_v49 }
 0xaaf   : > { %2008 = vadd.xlane.f32.xlu1 %v2007_v43  ;;  %v2056_v43 = vmul.f32 %v4702_v20, %v4487_v49 }
 0xab3   : > { %2011 = vadd.xlane.f32.xlu1 %v2010_v44 }
 0xaeb   : > { %v2037_v46 = vpop.xlane.xlu0 %2036 }
 0xaef   : > { %v2104_v26 = vpop.permute.xlu0 %2103 }
 0xaf0   : > { %v2112_v58 = vadd.f32 %v2104_v26, %v2088_v56 }
 0xaf3   : > { %v2040_v45 = vpop.xlane.xlu1 %2039 }
 0xaf4   : > { %v2047_v48 = vadd.f32 %v2040_v45, %v2037_v46 }
 0xafb   : > { %v2043_v47 = vpop.xlane.xlu1 %2042 }
 0xafc   : > { %v2048_v50 = vadd.f32 %v2047_v48, %v2043_v47 }
 0xb03   : > { %v2046_v53 = vpop.xlane.xlu1 %2045 }
 0xb04   : > { %v2049_v54 = vadd.f32 %v2048_v50, %v2046_v53 }
 0xb06   : > { %v2050_v34 = vmul.f32 0.03125, %v2049_v54 }
 0xb07   : > { %v2100_v7 = vpop.permute.xlu1 %2099 }
 0xb08   : > { %v2051_v55 = vadd.f32 1.1920929e-07, %v2050_v34  ;;  %v2110_v59 = vadd.f32 %v2100_v7, %v2086_v57  ;;  %v2055_v34 = vmul.f32 %v4697_v15, %v4487_v49 }
 0xb0a   : > { %3824 = vrsqrt.f32 %v2051_v55 }
 0xb14   : > { %v3825_v60 = vpop.eup %3824 }
 0xb15   : > { %v2114_v62 = vmul.f32 %v3825_v60, %v2110_v59  ;;  %v2116_v25 = vmul.f32 %v3825_v60, %v2112_v58 }
 0xb17   : > { %v2122_v63 = vpack.c.bf16 %v2114_v62, %v2114_v62  ;;  %v2124_v0 = vpack.c.bf16 %v2116_v25, %v2116_v25 }
 0xb19   : > { %2273 = vrot.lane.b32.xlu0 %v2124_v0, %s4097_s18  ;;  %2175 = vrot.lane.b32.xlu1 %v2122_v63, %s4097_s18 }
 0xb1d   : > { %2101 = vrot.lane.b32.xlu0 %v2091_v1, %s4100_s14  ;;  %2067 = vrot.lane.b32.xlu1 %v2058_v5, %s4100_s14 }
 0xb20   : > { %v2006_v40 = vpop.xlane.xlu0 %2005 }
 0xb21   : > { %2065 = vrot.lane.b32.xlu0 %v2057_v6, %s4100_s14  ;;  %2071 = vrot.lane.b32.xlu1 %v2060_v8, %s4100_s14 }
 0xb24   : > { %v2098_v11 = vpop.permute.xlu0 %2097 }
 0xb25   : > { %v2109_v13 = vadd.f32 %v2098_v11, %v2085_v52  ;;  %2069 = vrot.lane.b32.xlu0 %v2059_v10, %s4100_s14  ;;  %s3265_s14 = sshll.u32 %s4201_s17, 4  ;;  %s4104_s17 = smov [#allocation13]  }
 0xb27   : > { %v2113_v14 = vmul.f32 %v3825_v60, %v2109_v13 }
 0xb29   : > { %v2121_v16 = vpack.c.bf16 %v2113_v14, %v2113_v14 }
 0xb2b   : > { %2126 = vrot.lane.b32.xlu1 %v2121_v16, %s4097_s18 }
 0xb38   : > { %v2003_v17 = vpop.xlane.xlu1 %2002 }
 0xb39   : > { %v2013_v19 = vadd.f32 %v2006_v40, %v2003_v17 }
 0xb3c   : > { %v2009_v18 = vpop.xlane.xlu1 %2008 }
 0xb3d   : > { %v2014_v23 = vadd.f32 %v2013_v19, %v2009_v18  ;;  %v2368_v18 = vpack.c.bf16 %v4702_v20, %v4702_v20 }
 0xb40   : > { %v2012_v22 = vpop.xlane.xlu1 %2011 }
 0xb41   : > { %v2015_v21 = vadd.f32 %v2014_v23, %v2012_v22  ;;  %v2366_v22 = vpack.c.bf16 %v4692_v9, %v4692_v9 }
 0xb43   : > { %v2016_v24 = vmul.f32 0.03125, %v2015_v21 }
 0xb45   : > { %v2017_v27 = vadd.f32 1.1920929e-07, %v2016_v24  ;;  %v2367_v24 = vpack.c.bf16 %v4697_v15, %v4697_v15 }
 0xb47   : > { %3826 = vrsqrt.f32 %v2017_v27 }
 0xb51   : > { %v3827_v38 = vpop.eup %3826 }
 0xb8b   : > { %v2274_v28 = vpop.permute.xlu0 %2273  ;;  %v2176_v29 = vpop.permute.xlu1 %2175 }
 0xb8c   : > { %v2181_v3 = vsel %vm802_vm2, %v2176_v29, 0  ;;  %v2279_v50 = vsel %vm802_vm2, %v2274_v28, 0 }
 0xb8d   : > { %3522 = vmatpush3.bf16.xpose.msra.mxu0 %v2181_v3 }
 0xb8e   : > { %3533 = vmatprep.subr.bf16.mxu0 %v4095_v12 }
 0xb8f   : > { %v2102_v33 = vpop.permute.xlu0 %2101  ;;  %v2068_v35 = vpop.permute.xlu1 %2067 }
 0xb90   : > { %v2111_v36 = vadd.f32 %v2102_v33, %v2087_v31  ;;  %v2078_v37 = vadd.f32 %v2068_v35, %v2054_v32  ;;  %v2365_v33 = vpack.c.bf16 %v4687_v4, %v4687_v4 }
 0xb92   : > { %v2115_v39 = vmul.f32 %v3825_v60, %v2111_v36  ;;  %v2082_v41 = vmul.f32 %v3827_v38, %v2078_v37 }
 0xb93   : > { %v2066_v44 = vpop.permute.xlu0 %2065  ;;  %v2072_v2 = vpop.permute.xlu1 %2071 }
 0xb94   : > { %v2123_v45 = vpack.c.bf16 %v2115_v39, %v2115_v39  ;;  %v2118_v46 = vpack.c.bf16 %v2082_v41, %v2082_v41  ;;  %v2077_v47 = vadd.f32 %v2066_v44, %v2053_v42  ;;  %v2080_v48 = vadd.f32 %v2072_v2, %v2056_v43  ;;  %v3786_v44 = vld [vmem:[%s4970_s8 + $0x10] sm:$0xff]  }
 0xb96   : > { %v2081_v53 = vmul.f32 %v3827_v38, %v2077_v47  ;;  %v2084_v54 = vmul.f32 %v3827_v38, %v2080_v48  ;;  %2224 = vrot.lane.b32.xlu1 %v2123_v45, %s4097_s18  ;;  %3524 = vmatmul.mubr.msk.bf16.vlgmr.msra.gmra.mrb[32].mxu0 %vm802_vm2, %v2118_v46  ;;  %v3787_v45 = vld [vmem:[%s4970_s8 + $0x18] sm:$0xff]   ;;  %s535_s18 = sand.u32 1, %s4077_s30  }
 0xb97   : > { %3534 = vmatpush3.bf16.xpose.msra.mxu0 %v2279_v50  ;;  %v2070_v55 = vpop.permute.xlu0 %2069  ;;  %3535 = vmatprep.mubr.msk.bf16.mxu0 %vm4096_vm1, %v4095_v12  ;;  %s3026_s24 = scalar_lea.sflag [#allocation4], %s535_s18 }
 0xb98   : > { %v2079_v26 = vadd.f32 %v2070_v55, %v2055_v34  ;;  %3545 = vmatprep.subr.bf16.mxu0 %v4095_v12  ;;  %v2120_v56 = vpack.c.bf16 %v2084_v54, %v2084_v54  ;;  %v2117_v49 = vpack.c.bf16 %v2081_v53, %v2081_v53 }
 0xb9a   : > { %v2083_v7 = vmul.f32 %v3827_v38, %v2079_v26 }
 0xb9c   : > { %v2119_v62 = vpack.c.bf16 %v2083_v7, %v2083_v7 }
 0xb9d   : > { %v2127_v57 = vpop.permute.xlu1 %2126 }
 0xb9e   : > { %v2132_v58 = vsel %vm802_vm2, %v2127_v57, 0  ;;  %3536 = vmatmul.mubr.msk.bf16.vlgmr.msra.gmra.mrb[36].mxu0 %vm802_vm2, %v2120_v56 }
 0xb9f   : > { %3516 = vmatpush3.bf16.xpose.msra.mxu1 %v2132_v58  ;;  %3547 = vmatprep.mubr.msk.bf16.mxu0 %vm4096_vm1, %v4095_v12 }
 0xba0   : > { %3527 = vmatprep.subr.bf16.mxu1 %v4095_v12 }
 0xba6   : > { %3518 = vmatmul.mubr.msk.bf16.vlgmr.msra.gmra.mrb[40].mxu1 %vm802_vm2, %v2117_v49 }
 0xba7   : > { %3529 = vmatprep.mubr.msk.bf16.mxu1 %vm4096_vm1, %v4095_v12 }
 0xc08   : > { %v2225_v59 = vpop.permute.xlu1 %2224 }
 0xc09   : > { %v2230_v60 = vsel %vm802_vm2, %v2225_v59, 0 }
 0xc0a   : > { %3528 = vmatpush3.bf16.xpose.msra.mxu1 %v2230_v60 }
 0xc0b   : > { %3539 = vmatprep.subr.bf16.mxu1 %v4095_v12 }
 0xc11   : > { %3530 = vmatmul.mubr.msk.bf16.vlgmr.msra.gmra.mrb[44].mxu1 %vm802_vm2, %v2119_v62 }
 0xc12   : > { %3541 = vmatprep.mubr.msk.bf16.mxu1 %vm4096_vm1, %v4095_v12 }
 0xc69   : > { %v2217_v25 = vpop.f32.mrb[32].mxu0 }
 0xc6a   : > { %v2322_v63 = vsel %vm4520_vm3, %v2217_v25, -1e+30  ;;  %v3525_v0 = vpop.f32.mrb[33].mxu0  ;;  %v3227_v25 = vld [vmem:[%s4968_s6 + $0x10] sm:$0xf] }
 0xc6b   : > { %v2220_v1 = vpop.f32.mrb[34].mxu0  ;;  %v2328_v5 = vsel %vm802_vm2, %v2322_v63, -inf }
 0xc6c   : > { %2329 = vmax.xlane.f32.xlu1 %v2328_v5  ;;  %v3526_v6 = vpop.f32.mrb[35].mxu0 }
 0xc71   : > { %v2315_v8 = vpop.f32.mrb[36].mxu0 }
 0xc72   : > { %v2324_v40 = vsel %vm4520_vm3, %v2315_v8, -1e+30  ;;  %v3537_v52 = vpop.f32.mrb[37].mxu0 }
 0xc73   : > { %v2318_v10 = vpop.f32.mrb[38].mxu0  ;;  %v2334_v11 = vsel %vm802_vm2, %v2324_v40, -inf }
 0xc74   : > { %2335 = vmax.xlane.f32.xlu0 %v2334_v11  ;;  %v3538_v13 = vpop.f32.mrb[39].mxu0  ;;  %v3242_v11 = vld [vmem:[%s4971_s9 + $0x1] ss:$0 sm:$0xff] }
 0xc79   : > { %v2168_v14 = vpop.f32.mrb[40].mxu1 }
 0xc7a   : > { %v3519_v16 = vpop.f32.mrb[41].mxu1  ;;  %v2321_v23 = vsel %vm4520_vm3, %v2168_v14, -1e+30 }
 0xc7b   : > { %v2171_v17 = vpop.f32.mrb[42].mxu1  ;;  %v2325_v21 = vsel %vm802_vm2, %v2321_v23, -inf }
 0xc7c   : > { %v3520_v19 = vpop.f32.mrb[43].mxu1 }
 0xc7d   : > { %2517 = vrot.lane.b32.xlu1 %v2368_v18, %s4102_s23 }
 0xc8a   : > { %2419 = vrot.lane.b32.xlu0 %v2366_v22, %s4102_s23 }
 0xca1   : > { %2326 = vmax.xlane.f32.xlu1 %v2325_v21 }
 0xcb2   : > { %2468 = vrot.lane.b32.xlu1 %v2367_v24, %s4102_s23 }
 0xce4   : > { %v2266_v20 = vpop.f32.mrb[44].mxu1 }
 0xce5   : > { %v2323_v27 = vsel %vm4520_vm3, %v2266_v20, -1e+30  ;;  %v3531_v28 = vpop.f32.mrb[45].mxu1 }
 0xce6   : > { %v2269_v29 = vpop.f32.mrb[46].mxu1  ;;  %v2331_v9 = vsel %vm802_vm2, %v2323_v27, -inf }
 0xce7   : > { %v3532_v3 = vpop.f32.mrb[47].mxu1  ;;  %2332 = vmax.xlane.f32.xlu0 %v2331_v9  ;;  %v3228_v9 = vld [vmem:[%s4968_s6 + $0x14] sm:$0xf] }
 0xcf9   : > { %v2330_v31 = vpop.xlane.xlu1 %2329 }
 0xcfa   : > { %v2338_v32 = vsub.f32 %v2322_v63, %v2330_v31  ;;  %v2586_v63 = vsel %vm1191_vm4, %v3227_v25, 0 }
 0xcfc   : > { %v2343_v35 = vmul.f32 1.442695, %v2338_v32 }
 0xcfd   : > { %2370 = vrot.lane.b32.xlu0 %v2365_v33, %s4102_s23  ;;  %v2518_v41 = vpop.permute.xlu1 %2517  ;;  %s536_s23 = scalar_lea.vmem [#allocation13], %s535_s18 }
 0xcfe   : > { %3828 = vpow2.f32 %v2343_v35  ;;  %v2523_v43 = vsel %vm1191_vm4, %v2518_v41, 0  ;;  %s3038_s21 = sshll.u32 %s536_s23, 4  ;;  %s4922_s21 = int_to_ptr.vmem [resolvable:$true] %s3038_s21 }
 0xcff   : > { %s4007_s27 = scalar_lea.vmem %s4922_s21, 16 }
 0xd00   : > { %p4008_p5 = scmp.ne.s32.totalorder %s4922_s21, %s4007_s27 }
 0xd01   : > { %v2336_v15 = vpop.xlane.xlu0 %2335 }
 0xd02   : > { %v2340_v36 = vsub.f32 %v2324_v40, %v2336_v15  ;;  %v2632_v15 = vsel %vm1191_vm4, %v3228_v9, 0  ;;  %p4009_p10 = pnand %p4008_p5, %p5017_p9 }
 0xd04   : > { %v2347_v37 = vmul.f32 1.442695, %v2340_v36  ;;  %p4010_p2 = pneg %p4009_p10 }
 0xd05   : > { %v2420_v30 = vpop.permute.xlu0 %2419 }
 0xd06   : > { %3830 = vpow2.f32 %v2347_v37  ;;  %v2425_v38 = vsel %vm1191_vm4, %v2420_v30, 0 }
 0xd07   : > { %3546 = vmatpush3.bf16.msra.mxu0 %v2425_v38 }
 0xd08   : > { %v3829_v39 = vpop.eup %3828  ;;  %3557 = vmatprep.subr.bf16.mxu0 %v4095_v12 }
 0xd09   : > { %v2362_v42 = vpack.c.bf16 %v3829_v39, %v3829_v39  ;;  %v2352_v46 = vsel %vm802_vm2, %v3829_v39, 0.0 }
 0xd0b   : > { %3548 = vmatmul.mubr.msk.bf16.vlgmr.msra.gmra.mrb[40].mxu0 %vm802_vm2, %v2362_v42 }
 0xd0c   : > { %3558 = vmatpush3.bf16.msra.mxu0 %v2523_v43  ;;  %3559 = vmatprep.mubr.msk.bf16.mxu0 %vm4096_vm1, %v4095_v12  ;;  %v3229_v43 = vld [vmem:[%s4968_s6 + $0x18] sm:$0xf] }
 0xd0d   : > { %3587 = vmatprep.subr.bf16.mxu0 %v4095_v12 }
 0xd10   : > { %v3831_v4 = vpop.eup %3830 }
 0xd11   : > { %v2364_v2 = vpack.c.bf16 %v3831_v4, %v3831_v4  ;;  %v2358_v34 = vsel %vm802_vm2, %v3831_v4, 0.0 }
 0xd13   : > { %3560 = vmatmul.mubr.msk.bf16.vlgmr.msra.gmra.mrb[44].mxu0 %vm802_vm2, %v2364_v2 }
 0xd14   : > { %3588 = vmatpush3.bf16.msra.mxu0 %v3786_v44  ;;  %3591 = vmatprep.mubr.msk.bf16.mxu0 %vm4096_vm1, %v4095_v12  ;;  %v2678_v44 = vsel %vm1191_vm4, %v3229_v43, 0 }
 0xd15   : > { %3589 = vmatprep.subr.bf16.mxu0 %v4095_v12 }
 0xd18   : > { %3590 = vmatpush3.bf16.msra.mxu0 %v3787_v45 }
 0xd19   : > { %3607 = vmatprep.subr.bf16.mxu0 %v4095_v12 }
 0xd1b   : > { %3592 = vmatmul.mubr.msk.bf16.vlgmr.msra.gmra.mrb[48].mxu0 %vm544_vm0, %v4663_v61 }
 0xd1c   : > { %2353 = vadd.xlane.f32.xlu0 %v2352_v46  ;;  %3611 = vmatprep.mubr.msk.bf16.mxu0 %vm4096_vm1, %v4095_v12 }
 0xd2e   : > { %v2327_v47 = vpop.xlane.xlu1 %2326 }
 0xd2f   : > { %v2337_v48 = vsub.f32 %v2321_v23, %v2327_v47  ;;  %v3230_v47 = vld [vmem:[%s4968_s6 + $0x1c] sm:$0xf] }
 0xd31   : > { %v2341_v50 = vmul.f32 1.442695, %v2337_v48 }
 0xd32   : > { %v2469_v57 = vpop.permute.xlu1 %2468 }
 0xd33   : > { %3832 = vpow2.f32 %v2341_v50  ;;  %v2474_v49 = vsel %vm1191_vm4, %v2469_v57, 0  ;;  %v2724_v50 = vsel %vm1191_vm4, %v3230_v47, 0 }
 0xd3d   : > { %v3833_v53 = vpop.eup %3832 }
 0xd3e   : > { %v2349_v54 = vsel %vm802_vm2, %v3833_v53, 0.0  ;;  %v2361_v58 = vpack.c.bf16 %v3833_v53, %v3833_v53 }
 0xd3f   : > { %2350 = vadd.xlane.f32.xlu1 %v2349_v54 }
 0xd43   : > { %2359 = vadd.xlane.f32.xlu1 %v2358_v34  ;;  %v3788_v34 = vld [vmem:[%s4972_s10 + $0x20] sm:$0xff]  }
 0xd74   : > { %v2333_v55 = vpop.xlane.xlu0 %2332 }
 0xd75   : > { %v2339_v26 = vsub.f32 %v2323_v27, %v2333_v55 }
 0xd77   : > { %v2345_v61 = vmul.f32 1.442695, %v2339_v26  ;;  %v3789_v26 = vld [vmem:[%s4972_s10 + $0x28] sm:$0xff]  }
 0xd78   : > { %v2371_v7 = vpop.permute.xlu0 %2370 }
 0xd79   : > { %3834 = vpow2.f32 %v2345_v61  ;;  %v2376_v56 = vsel %vm1191_vm4, %v2371_v7, 0  ;;  %v3790_v7 = vld [vmem:[%s4972_s10 + $0x30] sm:$0xff]  }
 0xd7a   : > { %3540 = vmatpush3.bf16.msra.mxu1 %v2376_v56 }
 0xd7b   : > { %3551 = vmatprep.subr.bf16.mxu1 %v4095_v12 }
 0xd7d   : > { %3542 = vmatmul.mubr.msk.bf16.vlgmr.msra.gmra.mrb[48].mxu1 %vm802_vm2, %v2361_v58  ;;  %v3791_v58 = vld [vmem:[%s4972_s10 + $0x38] sm:$0xff]  }
 0xd7e   : > { %3552 = vmatpush3.bf16.msra.mxu1 %v2474_v49  ;;  %3553 = vmatprep.mubr.msk.bf16.mxu1 %vm4096_vm1, %v4095_v12 }
 0xd7f   : > { %3563 = vmatprep.subr.bf16.mxu1 %v4095_v12 }
 0xd83   : > { %v3835_v59 = vpop.eup %3834 }
 0xd84   : > { %v2355_v60 = vsel %vm802_vm2, %v3835_v59, 0.0  ;;  %v2363_v62 = vpack.c.bf16 %v3835_v59, %v3835_v59 }
 0xd85   : > { %2356 = vadd.xlane.f32.xlu0 %v2355_v60  ;;  %v3236_v60 = vld [vmem:[%s4969_s7 + $0x1] ss:$0 sm:$0xff] }
 0xd86   : > { %3554 = vmatmul.mubr.msk.bf16.vlgmr.msra.gmra.mrb[52].mxu1 %vm802_vm2, %v2363_v62  ;;  %v3255_v62 = vld [vmem:[%s4973_s11 + $0x1] ss:$0 sm:$0xff] }
 0xd87   : > { %3565 = vmatprep.mubr.msk.bf16.mxu1 %vm4096_vm1, %v4095_v12  ;;  %3564 = vmatpush3.bf16.msra.mxu1 %v2586_v63  ;;  %v3618_v25 = vadd.f32 %v3255_v62, %v3236_v60  ;;  %v2944_v63 = vstv %s3261_s20  ;;  %s5016_s20 = sld [smem:[#allocation27_spill]] }
 0xd88   : > { %3569 = vmatprep.subr.bf16.mxu1 %v4095_v12 }
 0xd8d   : > { %s4920_s28 = scalar_lea.hbm %s5016_s20, %s3265_s14 }
 0xda9   : > { %v2354_v27 = vpop.xlane.xlu0 %2353 }
 0xdcc   : > { %v2351_v20 = vpop.xlane.xlu1 %2350 }
 0xdd0   : > { %v2360_v2 = vpop.xlane.xlu1 %2359 }
 0xdde   : > { %v2461_v0 = vpop.f32.mrb[40].mxu0 }
 0xddf   : > { %v3549_v1 = vpop.f32.mrb[41].mxu0 }
 0xde0   : > { %v2464_v5 = vpop.f32.mrb[42].mxu0  ;;  %v2945_v1 = vmul.f32 %v4655_v51, %v2944_v63  ;;  %v3793_v51 = vld [vmem:[%s4974_s12 + $0x8] sm:$0xff]  }
 0xde1   : > { %v3550_v6 = vpop.f32.mrb[43].mxu0 }
 0xde6   : > { %v4844_v8 = vpop.f32.mrb[44].mxu0 }
 0xde7   : > { %v3561_v40 = vpop.f32.mrb[45].mxu0 }
 0xde8   : > { %v2562_v52 = vpop.f32.mrb[46].mxu0 }
 0xde9   : > { %v3562_v10 = vpop.f32.mrb[47].mxu0 }
 0xdee   : > { %v2837_v13 = vpop.f32.mrb[48].mxu0 }
 0xdef   : > { %v4849_v14 = vadd.f32 %v3242_v11, %v2837_v13  ;;  %v3593_v16 = vpop.f32.mrb[49].mxu0  ;;  %v3792_v13 = vld [vmem:[%s4974_s12] sm:$0xff]  }
 0xdf0   : > { %v2840_v17 = vpop.f32.mrb[50].mxu0  ;;  %3608 = vmatpush3.bf16.msra.mxu0 %v3792_v13 }
 0xdf1   : > { %v2848_v18 = vsub.f32 0.0, %v4849_v14  ;;  %2844 = vrot.lane.b32.xlu0 %v4849_v14, %s4103_s16  ;;  %v3594_v19 = vpop.f32.mrb[51].mxu0  ;;  %3609 = vmatprep.subr.bf16.mxu0 %v4095_v12 }
 0xdf3   : > { %v2849_v22 = vmul.f32 1.442695, %v2848_v18 }
 0xdf4   : > { %3610 = vmatpush3.bf16.msra.mxu0 %v3793_v51 }
 0xdf5   : > { %3836 = vpow2.f32 %v2849_v22 }
 0xdff   : > { %v3837_v23 = vpop.eup %3836 }
 0xe00   : > { %v2851_v21 = vadd.f32 1.0, %v3837_v23 }
 0xe02   : > { %3838 = vrcp.f32 %v2851_v21 }
 0xe03   : > { %3840 = vrcp.f32 %v2351_v20 }
 0xe04   : > { %3842 = vrcp.f32 %v2354_v27 }
 0xe0c   : > { %v3839_v24 = vpop.eup %3838 }
 0xe0d   : > { %2854 = vrot.lane.b32.xlu1 %v3839_v24, %s4103_s16  ;;  %v3841_v28 = vpop.eup %3840  ;;  %s4011_s16 = sshll.u32 %s4104_s17, 4  ;;  %s4012_s16 = int_to_ptr.vmem [resolvable:$false] %s4011_s16 }
 0xe0e   : > { %v3843_v30 = vpop.eup %3842  ;;  %s4013_s22 = scalar_lea.vmem %s4012_s16, 32  ;;  %p4014_p3 = scmp.lt.s32.totalorder %s4922_s21, %s4012_s16 }
 0xe0f   : > { %v2570_v39 = vmul.f32 %v3843_v30, %v2461_v0  ;;  %p4015_p4 = scmp.lt.s32.totalorder %s4013_s22, %s4007_s27 }
 0xe11   : > { %v2574_v4 = vpack.c.bf16 %v2570_v39, %v2570_v39  ;;  %p4016_p7 = por %p4015_p4, %p4014_p3 }
 0xe12   : > { %v2357_v36 = vpop.xlane.xlu0 %2356 }
 0xe13   : > { %3844 = vrcp.f32 %v2357_v36  ;;  %p4017_p0 = pnand %p4016_p7, %p4010_p2 }
 0xe14   : > { %3846 = vrcp.f32 %v2360_v2 }
 0xe1d   : > { %v3845_v45 = vpop.eup %3844 }
 0xe1e   : > { %v3847_v53 = vpop.eup %3846 }
 0xe1f   : > { %v2572_v54 = vmul.f32 %v3847_v53, %v4844_v8 }
 0xe21   : > { %v2576_v55 = vpack.c.bf16 %v2572_v54, %v2572_v54 }
 0xe50   : > { %v2412_v29 = vpop.f32.mrb[48].mxu1 }
 0xe51   : > { %v2569_v3 = vmul.f32 %v3841_v28, %v2412_v29  ;;  %v3543_v31 = vpop.f32.mrb[49].mxu1 }
 0xe52   : > { %v2415_v32 = vpop.f32.mrb[50].mxu1 }
 0xe53   : > { %v2573_v33 = vpack.c.bf16 %v2569_v3, %v2569_v3  ;;  %v3544_v35 = vpop.f32.mrb[51].mxu1 }
 0xe55   : > { %3566 = vmatmul.mubr.msk.bf16.vlgmr.msra.gmra.mrb[56].mxu1 %vm802_vm2, %v2573_v33 }
 0xe56   : > { %3570 = vmatpush3.bf16.msra.mxu1 %v2632_v15  ;;  %3571 = vmatprep.mubr.msk.bf16.mxu1 %vm4096_vm1, %v4095_v12 }
 0xe57   : > { %3575 = vmatprep.subr.bf16.mxu1 %v4095_v12 }
 0xe59   : > { %v2510_v37 = vpop.f32.mrb[52].mxu1 }
 0xe5a   : > { %v3555_v38 = vpop.f32.mrb[53].mxu1  ;;  %v2571_v46 = vmul.f32 %v3845_v45, %v2510_v37 }
 0xe5b   : > { %v2513_v41 = vpop.f32.mrb[54].mxu1 }
 0xe5c   : > { %v3556_v42 = vpop.f32.mrb[55].mxu1  ;;  %v2575_v48 = vpack.c.bf16 %v2571_v46, %v2571_v46 }
 0xe61   : > { %3572 = vmatmul.mubr.msk.bf16.vlgmr.msra.gmra.mrb[56].mxu1 %vm802_vm2, %v2574_v4 }
 0xe62   : > { %3576 = vmatpush3.bf16.msra.mxu1 %v2678_v44  ;;  %3577 = vmatprep.mubr.msk.bf16.mxu1 %vm4096_vm1, %v4095_v12 }
 0xe63   : > { %3581 = vmatprep.subr.bf16.mxu1 %v4095_v12  ;;  %v2845_v61 = vpop.permute.xlu0 %2844 }
 0xe64   : > { %v2847_v57 = vmul.f32 %v2845_v61, %v4849_v14 }
 0xe6d   : > { %3578 = vmatmul.mubr.msk.bf16.vlgmr.msra.gmra.mrb[56].mxu1 %vm802_vm2, %v2575_v48 }
 0xe6e   : > { %3582 = vmatpush3.bf16.msra.mxu1 %v2724_v50  ;;  %3583 = vmatprep.mubr.msk.bf16.mxu1 %vm4096_vm1, %v4095_v12 }
 0xe6f   : > { %3595 = vmatprep.subr.bf16.mxu1 %v4095_v12 }
 0xe79   : > { %3584 = vmatmul.mubr.msk.bf16.vlgmr.msra.gmra.mrb[56].mxu1 %vm802_vm2, %v2576_v55 }
 0xe7a   : > { %3596 = vmatpush3.bf16.msra.mxu1 %v3788_v34  ;;  %3603 = vmatprep.mubr.msk.bf16.mxu1 %vm4096_vm1, %v4095_v12 }
 0xe7b   : > { %3597 = vmatprep.subr.bf16.mxu1 %v4095_v12 }
 0xe7e   : > { %3598 = vmatpush3.bf16.msra.mxu1 %v3789_v26 }
 0xe7f   : > { %3599 = vmatprep.subr.bf16.mxu1 %v4095_v12  ;;  %v2855_v56 = vpop.permute.xlu1 %2854 }
 0xe80   : > { %v2857_v49 = vmul.f32 %v2855_v56, %v2847_v57 }
 0xe82   : > { %3600 = vmatpush3.bf16.msra.mxu1 %v3790_v7  ;;  %v2858_v59 = vpack.c.bf16 %v2857_v49, %v2857_v49 }
 0xe83   : > { %3601 = vmatprep.subr.bf16.mxu1 %v4095_v12 }
 0xe86   : > { %3602 = vmatpush3.bf16.msra.mxu1 %v3791_v58 }
 0xe89   : > { %3604 = vmatmul.mubr.msk.bf16.vlgmr.msra.gmra.mrb[56].mxu1 %vm1711_vm5, %v2858_v59 }
 0xf5c   : > { %v2937_v0 = vpop.f32.mrb[56].mxu1 }
 0xf5d   : > { %v3619_v5 = vadd.f32 %v3618_v25, %v2937_v0  ;;  %v3605_v6 = vpop.f32.mrb[57].mxu1 }
 0xf5e   : > { %v2940_v8 = vpop.f32.mrb[58].mxu1 }
 0xf5f   : > { %v3620_v40 = vadd.f32 %v3619_v5, %v2945_v1  ;;  %v3606_v52 = vpop.f32.mrb[59].mxu1 }
 0xf61   : > { %v2948_v10 = vmul.f32 %v3620_v40, %v3620_v40 }
 0xf63   : > { %v2950_v11 = vsel %vm2949_vm6, %v2948_v10, 0.0 }
 0xf64   : > { %2951 = vadd.xlane.f32.xlu1 %v2950_v11 }
 0xff1   : > { %v2952_v14 = vpop.xlane.xlu1 %2951 }
 0xff2   : > { %v2953_v16 = vmul.f32 0.03125, %v2952_v14 }
 0xff4   : > { %v2954_v17 = vadd.f32 1.1920929e-07, %v2953_v16 }
 0xff6   : > { %3848 = vrsqrt.f32 %v2954_v17 }
0x1000   : > { %v3849_v18 = vpop.eup %3848 }
0x1001   : > { %v2956_v19 = vmul.f32 %v3849_v18, %v3620_v40 }
0x1003   : > { %v2957_v22 = vpack.c.bf16 %v2956_v19, %v2956_v19 }
0x1005   : > { %v2963_v23 = vshrl.u32 %v2957_v22, 16 }
0x1007   : > { %v2965_v21 = vrot.slane %v2963_v23, 3 }
0x1009   : > { %3612 = vmatmul.mubr.msk.bf16.vlgmr.msra.gmra.mrb[52].mxu0 %vm544_vm0, %v2965_v21 }
0x10dc   : > { %v3015_v24 = vpop.f32.mrb[52].mxu0 }
0x10dd   : > { %v3021_v12 = vmul.f32 0.033333335, %v3015_v24  ;;  %v3613_v20 = vpop.f32.mrb[53].mxu0 }
0x10de   : > { %v3018_v27 = vpop.f32.mrb[54].mxu0 }
0x10df   : > { %3850 = vtanh.f32 %v3021_v12  ;;  %v3614_v28 = vpop.f32.mrb[55].mxu0 }
0x10e9   : > { %v3851_v29 = vpop.eup %3850 }
0x10ea   : > { %v3023_v9 = vmul.f32 30.0, %v3851_v29 }
0x10ec   : > { %3024 = vst [vmem:[%s536_s23] sm:$0x1] %v3023_v9 }
0x10ed   : > { %4020 = shalt.err (!%p4017_p0)
}
0x10ee   : > { %s4021_s29 = scalar_lea.hbm %s4920_s28, 16  ;;  %s4025_s18 = scalar_lea.hbm %s5016_s20, 32 }
0x10ef   : > { %p4022_p8 = scmp.ne.s32.totalorder %s4920_s28, %s4021_s29  ;;  %p4026_p13 = scmp.lt.u32.totalorder %s4920_s28, %s5016_s20 }
0x10f0   : > { %p4027_p1 = scmp.lt.u32.totalorder %s4025_s18, %s4021_s29  ;;  %p4029_p5 = scmp.lt.u32.totalorder %s4021_s29, %s4920_s28 }
0x10f1   : > { %p4023_p11 = pnand %p4022_p8, %p5017_p9 }
0x10f2   : > { %p4028_p6 = por %p4027_p1, %p4026_p13 }
0x10f3   : > { %p4024_p12 = pneg %p4023_p11 }
0x10f4   : > { %p4030_p10 = por %p4029_p5, %p4028_p6 }
0x10f6   : > { %p4031_p2 = pnand %p4030_p10, %p4024_p12 }
0x10f8   : > { %4034 = shalt.err (!%p4031_p2)
}
0x10f9   : > { %3677 = dma.vmem_to_hbm [thread:$0]  (%p5017_p9), %s4922_s21, 16, %s4920_s28, %s3026_s24  }
0x10fa PF: > { %s5018_s15 = sld [smem:[#allocation21_spill]]  ;;  %s5019_s25 = sld [smem:[#allocation19_spill]] }
0x10fb   : > { %s5020_s27 = sld [smem:[#allocation25_spill]] }
0x1100   : > { %p3714_p3 = scmp.ge.s32.totalorder %s5018_s15, 2  ;;  %s3050_s17 = sand.u32 1, %s5019_s25  }
0x1101   : > { %p5021_p4 = scmp.ne.s32.totalorder %s5020_s27, 0  ;;  %s3051_s16 = scalar_lea.sflag [#allocation4], %s3050_s17 }
0x1103   : > { %p3699_p7 = pnand %p3714_p3, %p5021_p4 }
0x1105   : > { %4068 = dma.done.wait (!%p3699_p7), %s3051_s16, 16  }
0x1106   : > { %4070 = vsyncadd (!%p3699_p7), %s3051_s16, 4294967280  ;;  %s5022_s16 = sld [smem:[#allocation22_spill]]  ;;  %s5023_s22 = sld [smem:[#allocation20_spill]] }
0x1107   : > { %s5024_s15 = sld [smem:[#allocation23_spill]]  ;;  %s5025_s29 = smov %s4077_s30 }
0x110c   : > { %p28_p0 = scmp.ge.s32.totalorder %s5022_s16, 4   ;;  %s5026_s30 = smov %s5023_s22 }
0x110e   :  { %30 = sbr.rel (!%p28_p0) target bundleno = 10 (0xa), region = 144 }
0x1115   :  { %3055 = vsyncpa [#allocation3], 1 }
0x1116   :  { %3057 = vsyncpa [#allocation3 + $0x1], 1 }
0x1117   :  { %3058 = vsyncpa [#allocation7], 1 }
0x1118   :  { %3059 = vsyncpa [#allocation10], 1 }
0x1119   :  { %3060 = vsyncpa [#allocation4], 1 }
0x111a   :  { %3062 = vsyncpa [#allocation4 + $0x1], 1 }
0x111b   :  { %3063 = vsyncpa [#allocation5], 1 }
0x111c   :  { %3065 = vsyncpa [#allocation5 + $0x1], 1 }

</bundles_post_ra>
